<compile_context>
chip_gen: v7x
topology: tpu7x:2x2x1
jax: 0.10.0
libtpu: 0.0.40
codegen_flags: <defaults>
</compile_context>

<pallas_src>
import math
import functools

import jax
import jax.numpy as jnp
from jax import lax
from jax.experimental import pallas as pl
from jax.experimental.pallas import tpu as pltpu


# ----------------------------------------------------------------------------
# tiling helper
# ----------------------------------------------------------------------------
def _pick_tile(dim, pref):
    """Preferred tile if it divides `dim` evenly, else the full dim (always legal)."""
    return pref if (dim % pref == 0) else dim


# ----------------------------------------------------------------------------
# Pallas kernels
# ----------------------------------------------------------------------------
def _matmul_bias_kernel(x_ref, w_ref, b_ref, o_ref, acc_ref, *, activation):
    # x: (tm, tk) bf16, w: (tk, tn) bf16, b: (1, tn) f32, acc: (tm, tn) f32
    k = pl.program_id(2)

    @pl.when(k == 0)
    def _():
        acc_ref[...] = jnp.zeros_like(acc_ref)

    acc_ref[...] += jnp.dot(x_ref[...], w_ref[...],
                            preferred_element_type=jnp.float32)

    @pl.when(k == pl.num_programs(2) - 1)
    def _():
        y = acc_ref[...] + b_ref[...].astype(jnp.float32)
        if activation == "relu":
            y = jnp.maximum(y, 0.0)
        o_ref[...] = y.astype(o_ref.dtype)


def _matmul_residual_ln_kernel(x_ref, w_ref, b_ref, res_ref, g_ref, bt_ref,
                               o_ref, acc_ref, *, eps):
    # Fused: LayerNorm(x @ w + b + residual) * gamma + beta   (post-LN, residual add)
    # Grid is (M/tm, K/tk); the full model dim N stays in one block so row stats are exact.
    k = pl.program_id(1)

    @pl.when(k == 0)
    def _():
        acc_ref[...] = jnp.zeros_like(acc_ref)

    acc_ref[...] += jnp.dot(x_ref[...], w_ref[...],
                            preferred_element_type=jnp.float32)

    @pl.when(k == pl.num_programs(1) - 1)
    def _():
        y = (acc_ref[...]
             + b_ref[...].astype(jnp.float32)
             + res_ref[...].astype(jnp.float32))
        mean = jnp.mean(y, axis=-1, keepdims=True)
        var = jnp.mean((y - mean) ** 2, axis=-1, keepdims=True)
        norm = (y - mean) * lax.rsqrt(var + eps)
        o_ref[...] = (norm * g_ref[...].astype(jnp.float32)
                      + bt_ref[...].astype(jnp.float32)).astype(o_ref.dtype)


def _attention_kernel(qkv_ref, m_ref, o_ref, a_ref, *, n_head, dim, scale):
    # One grid step = one batch row, ALL heads processed here.
    # qkv: (1, S, 3D) bf16 (fused Q|K|V along the feature axis), m: (1, 1, S) additive key mask.
    Dh = dim // n_head
    mask = m_ref[0].astype(jnp.float32)                      # (1, S) -> broadcasts over query rows
    for h in range(n_head):                                  # static loop over heads
        q = qkv_ref[0, :, h * Dh:(h + 1) * Dh]               # (S, Dh) bf16
        k = qkv_ref[0, :, dim + h * Dh:dim + (h + 1) * Dh]   # (S, Dh) bf16
        v = qkv_ref[0, :, 2 * dim + h * Dh:2 * dim + (h + 1) * Dh]
        # scores: contract the head dim of q and k (no explicit transpose needed)
        s = lax.dot_general(q, k, (((1,), (1,)), ((), ())),
                            preferred_element_type=jnp.float32)        # (S, S) f32
        s = s * scale + mask
        s_max = jnp.max(s, axis=-1, keepdims=True)
        p = jnp.exp(s - s_max)
        attn = p / jnp.sum(p, axis=-1, keepdims=True)                  # (S, S) f32
        out = jnp.dot(attn.astype(v.dtype), v,
                      preferred_element_type=jnp.float32)              # (S, Dh) f32
        o_ref[0, :, h * Dh:(h + 1) * Dh] = out.astype(o_ref.dtype)
        a_ref[0, h, :, :] = attn.astype(a_ref.dtype)


# ----------------------------------------------------------------------------
# Pallas wrappers
# ----------------------------------------------------------------------------
def matmul_bias(x, w, b, *, activation=None, out_dtype=None,
                tm=256, tn=256, tk=512):
    M, K = x.shape
    K2, N = w.shape
    assert K == K2
    out_dtype = out_dtype if out_dtype is not None else x.dtype
    tm = _pick_tile(M, tm)
    tn = _pick_tile(N, tn)
    tk = _pick_tile(K, tk)
    grid = (M // tm, N // tn, K // tk)
    return pl.pallas_call(
        functools.partial(_matmul_bias_kernel, activation=activation),
        out_shape=jax.ShapeDtypeStruct((M, N), out_dtype),
        grid_spec=pltpu.PrefetchScalarGridSpec(
            num_scalar_prefetch=0,
            grid=grid,
            in_specs=[
                pl.BlockSpec((tm, tk), lambda i, j, k: (i, k)),
                pl.BlockSpec((tk, tn), lambda i, j, k: (k, j)),
                pl.BlockSpec((1, tn), lambda i, j, k: (0, j)),
            ],
            out_specs=pl.BlockSpec((tm, tn), lambda i, j, k: (i, j)),
            scratch_shapes=[pltpu.VMEM((tm, tn), jnp.float32)],
        ),
        compiler_params=pltpu.CompilerParams(
            dimension_semantics=("parallel", "parallel", "arbitrary")),
    )(x, w, b.reshape(1, N))


def matmul_residual_layernorm(x, w, b, res, gamma, beta, *, eps,
                              out_dtype=None, tm=256, tk=512):
    M, K = x.shape
    K2, N = w.shape
    assert K == K2 and res.shape == (M, N)
    out_dtype = out_dtype if out_dtype is not None else x.dtype
    tm = _pick_tile(M, tm)
    tk = _pick_tile(K, tk)
    grid = (M // tm, K // tk)
    return pl.pallas_call(
        functools.partial(_matmul_residual_ln_kernel, eps=eps),
        out_shape=jax.ShapeDtypeStruct((M, N), out_dtype),
        grid_spec=pltpu.PrefetchScalarGridSpec(
            num_scalar_prefetch=0,
            grid=grid,
            in_specs=[
                pl.BlockSpec((tm, tk), lambda i, k: (i, k)),
                pl.BlockSpec((tk, N), lambda i, k: (k, 0)),
                pl.BlockSpec((1, N), lambda i, k: (0, 0)),
                pl.BlockSpec((tm, N), lambda i, k: (i, 0)),
                pl.BlockSpec((1, N), lambda i, k: (0, 0)),
                pl.BlockSpec((1, N), lambda i, k: (0, 0)),
            ],
            out_specs=pl.BlockSpec((tm, N), lambda i, k: (i, 0)),
            scratch_shapes=[pltpu.VMEM((tm, N), jnp.float32)],
        ),
        compiler_params=pltpu.CompilerParams(
            dimension_semantics=("parallel", "arbitrary")),
    )(x, w, b.reshape(1, N), res, gamma.reshape(1, N), beta.reshape(1, N))


def mha_attention(qkv, addmask, *, n_head, dim, scale):
    # qkv: (B, S, 3D) bf16 (fused Q|K|V), addmask: (B, 1, S) f32 additive (-1e9 on pad keys)
    B, S, threeD = qkv.shape
    assert threeD == 3 * dim
    return pl.pallas_call(
        functools.partial(_attention_kernel, n_head=n_head, dim=dim, scale=scale),
        out_shape=(
            jax.ShapeDtypeStruct((B, S, dim), qkv.dtype),
            jax.ShapeDtypeStruct((B, n_head, S, S), jnp.float32),
        ),
        grid_spec=pltpu.PrefetchScalarGridSpec(
            num_scalar_prefetch=0,
            grid=(B,),
            in_specs=[
                pl.BlockSpec((1, S, 3 * dim), lambda b: (b, 0, 0)),
                pl.BlockSpec((1, 1, S), lambda b: (b, 0, 0)),
            ],
            out_specs=(
                pl.BlockSpec((1, S, dim), lambda b: (b, 0, 0)),
                pl.BlockSpec((1, n_head, S, S), lambda b: (b, 0, 0, 0)),
            ),
        ),
        compiler_params=pltpu.CompilerParams(dimension_semantics=("parallel",)),
    )(qkv, addmask)


# ----------------------------------------------------------------------------
# Parameter init (deterministic, synthetic) + positional encoding
# ----------------------------------------------------------------------------
def sinusoidal_pos_encoding(max_len, dim):
    pos = jnp.arange(max_len, dtype=jnp.float32)[:, None]
    two_i = jnp.arange(0, dim, 2, dtype=jnp.float32)
    angle = pos / jnp.power(10000.0, two_i / dim)
    pe = jnp.zeros((max_len, dim), dtype=jnp.float32)
    pe = pe.at[:, 0::2].set(jnp.sin(angle))
    pe = pe.at[:, 1::2].set(jnp.cos(angle))
    return pe


def init_params(key, dim, max_len, vocab_size, num_layers, ffn_hidden):
    def normal(k, shape, scale=0.02):
        return (scale * jax.random.normal(k, shape)).astype(jnp.bfloat16)

    kcount = [0]
    def nk():
        kcount[0] += 1
        return jax.random.fold_in(key, kcount[0])

    params = {
        "tok_emb": (0.02 * jax.random.normal(nk(), (vocab_size, dim))).astype(jnp.float32),
        "pos_enc": sinusoidal_pos_encoding(max_len, dim),
        "proj_w": normal(nk(), (dim, vocab_size)),
        "proj_b": jnp.zeros((vocab_size,), jnp.float32),
        "layers": [],
    }
    for _ in range(num_layers):
        layer = {
            # fused Q|K|V projection weight (D, 3D): one activation read instead of three
            "w_qkv": normal(nk(), (dim, 3 * dim)),
            "b_qkv": jnp.zeros((3 * dim,), jnp.float32),
            "wo": normal(nk(), (dim, dim)), "bo": jnp.zeros((dim,), jnp.float32),
            "ln1_g": jnp.ones((dim,), jnp.float32), "ln1_b": jnp.zeros((dim,), jnp.float32),
            "w1": normal(nk(), (dim, ffn_hidden)), "b1": jnp.zeros((ffn_hidden,), jnp.float32),
            "w2": normal(nk(), (ffn_hidden, dim)), "b2": jnp.zeros((dim,), jnp.float32),
            "ln2_g": jnp.ones((dim,), jnp.float32), "ln2_b": jnp.zeros((dim,), jnp.float32),
        }
        params["layers"].append(layer)
    return params


# ----------------------------------------------------------------------------
# Forward pass (matches Transformer_Encoder_Model.forward semantics, eval mode)
# ----------------------------------------------------------------------------
def transformer_encoder_forward(params, token_indices, *, dim, n_head, pad_index,
                                num_layers, vocab_size, eps):
    B, S = token_indices.shape
    D = dim
    H = n_head
    Dh = D // H
    scale = 1.0 / math.sqrt(Dh)

    # embedding: token embedding + sinusoidal positional encoding (dropout = identity in eval)
    x = params["tok_emb"][token_indices] + params["pos_enc"][:S][None, :, :]   # (B, S, D) f32
    x = x.astype(jnp.bfloat16)

    # padding mask on keys -> additive mask (B, 1, S)
    addmask = jnp.where(token_indices != pad_index, 0.0, -1e9).astype(jnp.float32)
    addmask = addmask.reshape(B, 1, S)

    attentions = []
    x2 = x.reshape(B * S, D)
    for l in range(num_layers):
        p = params["layers"][l]

        # --- fused QKV projection + multi-head self-attention ---
        qkv = matmul_bias(x2, p["w_qkv"], p["b_qkv"], out_dtype=jnp.bfloat16)
        qkv = qkv.reshape(B, S, 3 * D)
        ctx, attn = mha_attention(qkv, addmask, n_head=H, dim=D, scale=scale)
        attentions.append(attn)                               # (B, H, S, S)

        # --- output projection + residual + LayerNorm1 (fused) ---
        x2 = matmul_residual_layernorm(ctx.reshape(B * S, D), p["wo"], p["bo"],
                                       x2, p["ln1_g"], p["ln1_b"], eps=eps,
                                       out_dtype=jnp.bfloat16)

        # --- position-wise FFN: w1+ReLU, then w2 + residual + LayerNorm2 (fused) ---
        h = matmul_bias(x2, p["w1"], p["b1"], activation="relu",
                        out_dtype=jnp.bfloat16)
        x2 = matmul_residual_layernorm(h, p["w2"], p["b2"],
                                       x2, p["ln2_g"], p["ln2_b"], eps=eps,
                                       out_dtype=jnp.bfloat16)

    # final vocabulary projection (f32 logits)
    logits = matmul_bias(x2, params["proj_w"], params["proj_b"],
                         out_dtype=jnp.float32).reshape(B, S, vocab_size)
    return logits, attentions


# ----------------------------------------------------------------------------
# Driver
# ----------------------------------------------------------------------------
if __name__ == "__main__":
    # small config consistent with the module's __init__ signature
    dim = 32
    max_len = 8
    vocab_size = 16
    pad_index = 0
    num_layers = 2
    ffn_hidden = 64
    n_head = 4
    drop_prob = 0.1   # unused (eval mode)
    eps = 1e-5

    batch = 2
    seq = 8

    root = jax.random.PRNGKey(0)
    k_tok, k_param = jax.random.split(root)

    # deterministic token indices in [1, vocab), with a couple of pad tokens at the end
    tokens = jax.random.randint(k_tok, (batch, seq), 1, vocab_size, dtype=jnp.int32)
    tokens = tokens.at[:, -2:].set(pad_index)

    params = init_params(k_param, dim, max_len, vocab_size, num_layers, ffn_hidden)

    fwd = jax.jit(functools.partial(
        transformer_encoder_forward,
        dim=dim, n_head=n_head, pad_index=pad_index,
        num_layers=num_layers, vocab_size=vocab_size, eps=eps))

    logits, attentions = fwd(params, tokens)

    jax.block_until_ready(logits)
    for a in attentions:
        jax.block_until_ready(a)

    assert logits.shape == (batch, seq, vocab_size)
    assert len(attentions) == num_layers
    assert attentions[0].shape == (batch, n_head, seq, seq)
    assert bool(jnp.all(jnp.isfinite(logits)))
    # attention rows sum to 1
    assert bool(jnp.allclose(jnp.sum(attentions[0], axis=-1), 1.0, atol=1e-3))

    print("KERNEL_OK")
</pallas_src>

<mosaic_0001>
module attributes {stable_mosaic.version = 11 : i64} {
  func.func @_matmul_residual_ln_kernel(%arg0: i32, %arg1: i32, %arg2: memref<16x32xbf16, #tpu.memory_space<vmem>>, %arg3: memref<32x32xbf16, #tpu.memory_space<vmem>>, %arg4: memref<1x32xf32, #tpu.memory_space<vmem>>, %arg5: memref<16x32xbf16, #tpu.memory_space<vmem>>, %arg6: memref<1x32xf32, #tpu.memory_space<vmem>>, %arg7: memref<1x32xf32, #tpu.memory_space<vmem>>, %arg8: memref<16x32xbf16, #tpu.memory_space<vmem>>, %arg9: memref<16x32xf32, #tpu.memory_space<vmem>>) attributes {dimension_semantics = [#tpu.dimension_semantics<parallel>, #tpu.dimension_semantics<arbitrary>], iteration_bounds = array<i64: 1, 1>, scalar_prefetch = 0 : i64, scratch_operands = 1 : i64, tpu.core_type = #tpu.core_type<tc>, window_params = [{transform_indices = @transform_0, window_bounds = array<i64: 16, 32>}, {transform_indices = @transform_1, window_bounds = array<i64: 32, 32>}, {pipeline_mode = #tpu.pipeline_mode<synchronous>, transform_indices = @transform_2, window_bounds = array<i64: 1, 32>}, {transform_indices = @transform_3, window_bounds = array<i64: 16, 32>}, {pipeline_mode = #tpu.pipeline_mode<synchronous>, transform_indices = @transform_4, window_bounds = array<i64: 1, 32>}, {pipeline_mode = #tpu.pipeline_mode<synchronous>, transform_indices = @transform_5, window_bounds = array<i64: 1, 32>}, {transform_indices = @transform_6, window_bounds = array<i64: 16, 32>}]} {
    %c0_i32 = arith.constant 0 : i32
    %0 = arith.cmpi eq, %arg1, %c0_i32 : i32
    %1 = arith.extui %0 : i1 to i32
    %c0_i32_0 = arith.constant 0 : i32
    %2 = arith.cmpi ne, %1, %c0_i32_0 : i32
    scf.if %2 {
      %cst_10 = arith.constant 0.000000e+00 : f32
      %12 = vector.broadcast %cst_10 : f32 to vector<16x32xf32>
      %c0_11 = arith.constant 0 : index
      %c0_12 = arith.constant 0 : index
      %13 = vector.load %arg9[%c0_11, %c0_12] : memref<16x32xf32, #tpu.memory_space<vmem>>, vector<16x32xf32>
      tpu.vector_store %arg9[%c0_11, %c0_12], %12 {strides = array<i32>} : memref<16x32xf32, #tpu.memory_space<vmem>>, vector<16x32xf32>,
    } else {
    }
    %c0 = arith.constant 0 : index
    %c0_1 = arith.constant 0 : index
    %3 = vector.load %arg9[%c0, %c0_1] : memref<16x32xf32, #tpu.memory_space<vmem>>, vector<16x32xf32>
    %c0_2 = arith.constant 0 : index
    %c0_3 = arith.constant 0 : index
    %4 = vector.load %arg2[%c0_2, %c0_3] : memref<16x32xbf16, #tpu.memory_space<vmem>>, vector<16x32xbf16>
    %c0_4 = arith.constant 0 : index
    %c0_5 = arith.constant 0 : index
    %5 = vector.load %arg3[%c0_4, %c0_5] : memref<32x32xbf16, #tpu.memory_space<vmem>>, vector<32x32xbf16>
    %cst = arith.constant dense<0.000000e+00> : vector<16x32xf32>
    %6 = tpu.matmul %4, %5, %cst {dimension_numbers = #tpu.dot_dimension_numbers<[1], [0], [0], [1], [0, 0, 1, 1], [], []>} : vector<16x32xbf16>, vector<32x32xbf16>, vector<16x32xf32> -> vector<16x32xf32>
    %7 = arith.addf %3, %6 : vector<16x32xf32>
    %c0_6 = arith.constant 0 : index
    %c0_7 = arith.constant 0 : index
    %8 = vector.load %arg9[%c0_6, %c0_7] : memref<16x32xf32, #tpu.memory_space<vmem>>, vector<16x32xf32>
    tpu.vector_store %arg9[%c0_6, %c0_7], %7 {strides = array<i32>} : memref<16x32xf32, #tpu.memory_space<vmem>>, vector<16x32xf32>,
    %c0_i32_8 = arith.constant 0 : i32
    %9 = arith.cmpi eq, %arg1, %c0_i32_8 : i32
    %10 = arith.extui %9 : i1 to i32
    %c0_i32_9 = arith.constant 0 : i32
    %11 = arith.cmpi ne, %10, %c0_i32_9 : i32
    scf.if %11 {
      %c0_10 = arith.constant 0 : index
      %c0_11 = arith.constant 0 : index
      %12 = vector.load %arg9[%c0_10, %c0_11] : memref<16x32xf32, #tpu.memory_space<vmem>>, vector<16x32xf32>
      %c0_12 = arith.constant 0 : index
      %c0_13 = arith.constant 0 : index
      %13 = vector.load %arg4[%c0_12, %c0_13] : memref<1x32xf32, #tpu.memory_space<vmem>>, vector<1x32xf32>
      %14 = vector.broadcast %13 : vector<1x32xf32> to vector<16x32xf32>
      %15 = arith.addf %12, %14 : vector<16x32xf32>
      %c0_14 = arith.constant 0 : index
      %c0_15 = arith.constant 0 : index
      %16 = vector.load %arg5[%c0_14, %c0_15] : memref<16x32xbf16, #tpu.memory_space<vmem>>, vector<16x32xbf16>
      %17 = arith.extf %16 : vector<16x32xbf16> to vector<16x32xf32>
      %18 = arith.addf %15, %17 : vector<16x32xf32>
      %cst_16 = arith.constant dense<0.000000e+00> : vector<16xf32>
      %19 = vector.multi_reduction <add>, %18, %cst_16 [1] : vector<16x32xf32> to vector<16xf32>
      %20 = vector.shape_cast %19 : vector<16xf32> to vector<16x1xf32>
      %cst_17 = arith.constant 3.200000e+01 : f32
      %21 = vector.broadcast %cst_17 : f32 to vector<16x1xf32>
      %22 = arith.divf %20, %21 : vector<16x1xf32>
      %23 = vector.broadcast %22 : vector<16x1xf32> to vector<16x32xf32>
      %24 = arith.subf %18, %23 : vector<16x32xf32>
      %25 = arith.mulf %24, %24 : vector<16x32xf32>
      %cst_18 = arith.constant dense<0.000000e+00> : vector<16xf32>
      %26 = vector.multi_reduction <add>, %25, %cst_18 [1] : vector<16x32xf32> to vector<16xf32>
      %27 = vector.shape_cast %26 : vector<16xf32> to vector<16x1xf32>
      %cst_19 = arith.constant 3.200000e+01 : f32
      %28 = vector.broadcast %cst_19 : f32 to vector<16x1xf32>
      %29 = arith.divf %27, %28 : vector<16x1xf32>
      %30 = vector.broadcast %22 : vector<16x1xf32> to vector<16x32xf32>
      %31 = arith.subf %18, %30 : vector<16x32xf32>
      %cst_20 = arith.constant 9.99999974E-6 : f32
      %32 = vector.broadcast %cst_20 : f32 to vector<16x1xf32>
      %33 = arith.addf %29, %32 : vector<16x1xf32>
      %34 = math.rsqrt %33 : vector<16x1xf32>
      %35 = vector.broadcast %34 : vector<16x1xf32> to vector<16x32xf32>
      %36 = arith.mulf %31, %35 : vector<16x32xf32>
      %c0_21 = arith.constant 0 : index
      %c0_22 = arith.constant 0 : index
      %37 = vector.load %arg6[%c0_21, %c0_22] : memref<1x32xf32, #tpu.memory_space<vmem>>, vector<1x32xf32>
      %38 = vector.broadcast %37 : vector<1x32xf32> to vector<16x32xf32>
      %39 = arith.mulf %36, %38 : vector<16x32xf32>
      %c0_23 = arith.constant 0 : index
      %c0_24 = arith.constant 0 : index
      %40 = vector.load %arg7[%c0_23, %c0_24] : memref<1x32xf32, #tpu.memory_space<vmem>>, vector<1x32xf32>
      %41 = vector.broadcast %40 : vector<1x32xf32> to vector<16x32xf32>
      %42 = arith.addf %39, %41 : vector<16x32xf32>
      %43 = arith.truncf %42 : vector<16x32xf32> to vector<16x32xbf16>
      %c0_25 = arith.constant 0 : index
      %c0_26 = arith.constant 0 : index
      %44 = vector.load %arg8[%c0_25, %c0_26] : memref<16x32xbf16, #tpu.memory_space<vmem>>, vector<16x32xbf16>
      tpu.vector_store %arg8[%c0_25, %c0_26], %43 {strides = array<i32>} : memref<16x32xbf16, #tpu.memory_space<vmem>>, vector<16x32xbf16>,
    } else {
    }
    return
  }
  func.func @transform_0(%arg0: i32, %arg1: i32) -> (i32, i32) {
    %c0_i32 = arith.constant 0 : i32
    return %arg0, %arg1 : i32, i32
  }
  func.func @transform_1(%arg0: i32, %arg1: i32) -> (i32, i32) {
    %c0_i32 = arith.constant 0 : i32
    %c0_i32_0 = arith.constant 0 : i32
    return %arg1, %c0_i32 : i32, i32
  }
  func.func @transform_2(%arg0: i32, %arg1: i32) -> (i32, i32) {
    %c0_i32 = arith.constant 0 : i32
    %c0_i32_0 = arith.constant 0 : i32
    %c0_i32_1 = arith.constant 0 : i32
    return %c0_i32, %c0_i32_0 : i32, i32
  }
  func.func @transform_3(%arg0: i32, %arg1: i32) -> (i32, i32) {
    %c0_i32 = arith.constant 0 : i32
    %c0_i32_0 = arith.constant 0 : i32
    return %arg0, %c0_i32 : i32, i32
  }
  func.func @transform_4(%arg0: i32, %arg1: i32) -> (i32, i32) {
    %c0_i32 = arith.constant 0 : i32
    %c0_i32_0 = arith.constant 0 : i32
    %c0_i32_1 = arith.constant 0 : i32
    return %c0_i32, %c0_i32_0 : i32, i32
  }
  func.func @transform_5(%arg0: i32, %arg1: i32) -> (i32, i32) {
    %c0_i32 = arith.constant 0 : i32
    %c0_i32_0 = arith.constant 0 : i32
    %c0_i32_1 = arith.constant 0 : i32
    return %c0_i32, %c0_i32_0 : i32, i32
  }
  func.func @transform_6(%arg0: i32, %arg1: i32) -> (i32, i32) {
    %c0_i32 = arith.constant 0 : i32
    %c0_i32_0 = arith.constant 0 : i32
    return %arg0, %c0_i32 : i32, i32
  }
}

module attributes {stable_mosaic.version = 11 : i64} {
  func.func @_matmul_bias_kernel(%arg0: i32, %arg1: i32, %arg2: i32, %arg3: memref<16x32xbf16, #tpu.memory_space<vmem>>, %arg4: memref<32x96xbf16, #tpu.memory_space<vmem>>, %arg5: memref<1x96xf32, #tpu.memory_space<vmem>>, %arg6: memref<16x96xbf16, #tpu.memory_space<vmem>>, %arg7: memref<16x96xf32, #tpu.memory_space<vmem>>) attributes {dimension_semantics = [#tpu.dimension_semantics<parallel>, #tpu.dimension_semantics<parallel>, #tpu.dimension_semantics<arbitrary>], iteration_bounds = array<i64: 1, 1, 1>, scalar_prefetch = 0 : i64, scratch_operands = 1 : i64, tpu.core_type = #tpu.core_type<tc>, window_params = [{transform_indices = @transform_0, window_bounds = array<i64: 16, 32>}, {transform_indices = @transform_1, window_bounds = array<i64: 32, 96>}, {transform_indices = @transform_2, window_bounds = array<i64: 1, 96>}, {transform_indices = @transform_3, window_bounds = array<i64: 16, 96>}]} {
    %c0_i32 = arith.constant 0 : i32
    %0 = arith.cmpi eq, %arg2, %c0_i32 : i32
    %1 = arith.extui %0 : i1 to i32
    %c0_i32_0 = arith.constant 0 : i32
    %2 = arith.cmpi ne, %1, %c0_i32_0 : i32
    scf.if %2 {
      %cst_10 = arith.constant 0.000000e+00 : f32
      %12 = vector.broadcast %cst_10 : f32 to vector<16x96xf32>
      %c0_11 = arith.constant 0 : index
      %c0_12 = arith.constant 0 : index
      %13 = vector.load %arg7[%c0_11, %c0_12] : memref<16x96xf32, #tpu.memory_space<vmem>>, vector<16x96xf32>
      tpu.vector_store %arg7[%c0_11, %c0_12], %12 {strides = array<i32>} : memref<16x96xf32, #tpu.memory_space<vmem>>, vector<16x96xf32>,
    } else {
    }
    %c0 = arith.constant 0 : index
    %c0_1 = arith.constant 0 : index
    %3 = vector.load %arg7[%c0, %c0_1] : memref<16x96xf32, #tpu.memory_space<vmem>>, vector<16x96xf32>
    %c0_2 = arith.constant 0 : index
    %c0_3 = arith.constant 0 : index
    %4 = vector.load %arg3[%c0_2, %c0_3] : memref<16x32xbf16, #tpu.memory_space<vmem>>, vector<16x32xbf16>
    %c0_4 = arith.constant 0 : index
    %c0_5 = arith.constant 0 : index
    %5 = vector.load %arg4[%c0_4, %c0_5] : memref<32x96xbf16, #tpu.memory_space<vmem>>, vector<32x96xbf16>
    %cst = arith.constant dense<0.000000e+00> : vector<16x96xf32>
    %6 = tpu.matmul %4, %5, %cst {dimension_numbers = #tpu.dot_dimension_numbers<[1], [0], [0], [1], [0, 0, 1, 1], [], []>} : vector<16x32xbf16>, vector<32x96xbf16>, vector<16x96xf32> -> vector<16x96xf32>
    %7 = arith.addf %3, %6 : vector<16x96xf32>
    %c0_6 = arith.constant 0 : index
    %c0_7 = arith.constant 0 : index
    %8 = vector.load %arg7[%c0_6, %c0_7] : memref<16x96xf32, #tpu.memory_space<vmem>>, vector<16x96xf32>
    tpu.vector_store %arg7[%c0_6, %c0_7], %7 {strides = array<i32>} : memref<16x96xf32, #tpu.memory_space<vmem>>, vector<16x96xf32>,
    %c0_i32_8 = arith.constant 0 : i32
    %9 = arith.cmpi eq, %arg2, %c0_i32_8 : i32
    %10 = arith.extui %9 : i1 to i32
    %c0_i32_9 = arith.constant 0 : i32
    %11 = arith.cmpi ne, %10, %c0_i32_9 : i32
    scf.if %11 {
      %c0_10 = arith.constant 0 : index
      %c0_11 = arith.constant 0 : index
      %12 = vector.load %arg7[%c0_10, %c0_11] : memref<16x96xf32, #tpu.memory_space<vmem>>, vector<16x96xf32>
      %c0_12 = arith.constant 0 : index
      %c0_13 = arith.constant 0 : index
      %13 = vector.load %arg5[%c0_12, %c0_13] : memref<1x96xf32, #tpu.memory_space<vmem>>, vector<1x96xf32>
      %14 = vector.broadcast %13 : vector<1x96xf32> to vector<16x96xf32>
      %15 = arith.addf %12, %14 : vector<16x96xf32>
      %16 = arith.truncf %15 : vector<16x96xf32> to vector<16x96xbf16>
      %c0_14 = arith.constant 0 : index
      %c0_15 = arith.constant 0 : index
      %17 = vector.load %arg6[%c0_14, %c0_15] : memref<16x96xbf16, #tpu.memory_space<vmem>>, vector<16x96xbf16>
      tpu.vector_store %arg6[%c0_14, %c0_15], %16 {strides = array<i32>} : memref<16x96xbf16, #tpu.memory_space<vmem>>, vector<16x96xbf16>,
    } else {
    }
    return
  }
  func.func @transform_0(%arg0: i32, %arg1: i32, %arg2: i32) -> (i32, i32) {
    %c0_i32 = arith.constant 0 : i32
    return %arg0, %arg2 : i32, i32
  }
  func.func @transform_1(%arg0: i32, %arg1: i32, %arg2: i32) -> (i32, i32) {
    %c0_i32 = arith.constant 0 : i32
    return %arg2, %arg1 : i32, i32
  }
  func.func @transform_2(%arg0: i32, %arg1: i32, %arg2: i32) -> (i32, i32) {
    %c0_i32 = arith.constant 0 : i32
    %c0_i32_0 = arith.constant 0 : i32
    return %c0_i32, %arg1 : i32, i32
  }
  func.func @transform_3(%arg0: i32, %arg1: i32, %arg2: i32) -> (i32, i32) {
    %c0_i32 = arith.constant 0 : i32
    return %arg0, %arg1 : i32, i32
  }
}

module attributes {stable_mosaic.version = 11 : i64} {
  func.func @_attention_kernel(%arg0: i32, %arg1: memref<1x8x96xbf16, #tpu.memory_space<vmem>>, %arg2: memref<1x1x8xf32, #tpu.memory_space<vmem>>, %arg3: memref<1x8x32xbf16, #tpu.memory_space<vmem>>, %arg4: memref<1x4x8x8xf32, #tpu.memory_space<vmem>>) attributes {dimension_semantics = [#tpu.dimension_semantics<parallel>], iteration_bounds = array<i64: 2>, scalar_prefetch = 0 : i64, scratch_operands = 0 : i64, tpu.core_type = #tpu.core_type<tc>, window_params = [{transform_indices = @transform_0, window_bounds = array<i64: 1, 8, 96>}, {transform_indices = @transform_1, window_bounds = array<i64: 1, 1, 8>}, {transform_indices = @transform_2, window_bounds = array<i64: 1, 8, 32>}, {transform_indices = @transform_3, window_bounds = array<i64: 1, 4, 8, 8>}]} {
    %c0 = arith.constant 0 : index
    %c0_0 = arith.constant 0 : index
    %c0_1 = arith.constant 0 : index
    %0 = vector.load %arg2[%c0, %c0_0, %c0_1] : memref<1x1x8xf32, #tpu.memory_space<vmem>>, vector<1x1x8xf32>
    %1 = vector.shape_cast %0 : vector<1x1x8xf32> to vector<1x8xf32>
    %c0_2 = arith.constant 0 : index
    %c0_3 = arith.constant 0 : index
    %c0_4 = arith.constant 0 : index
    %2 = vector.load %arg1[%c0_2, %c0_3, %c0_4] : memref<1x8x96xbf16, #tpu.memory_space<vmem>>, vector<1x8x8xbf16>
    %3 = vector.shape_cast %2 : vector<1x8x8xbf16> to vector<8x8xbf16>
    %c0_5 = arith.constant 0 : index
    %c0_6 = arith.constant 0 : index
    %c32 = arith.constant 32 : index
    %4 = vector.load %arg1[%c0_5, %c0_6, %c32] : memref<1x8x96xbf16, #tpu.memory_space<vmem>>, vector<1x8x8xbf16>
    %5 = vector.shape_cast %4 : vector<1x8x8xbf16> to vector<8x8xbf16>
    %c0_7 = arith.constant 0 : index
    %c0_8 = arith.constant 0 : index
    %c64 = arith.constant 64 : index
    %6 = vector.load %arg1[%c0_7, %c0_8, %c64] : memref<1x8x96xbf16, #tpu.memory_space<vmem>>, vector<1x8x8xbf16>
    %7 = vector.shape_cast %6 : vector<1x8x8xbf16> to vector<8x8xbf16>
    %cst = arith.constant dense<0.000000e+00> : vector<8x8xf32>
    %8 = tpu.matmul %3, %5, %cst {dimension_numbers = #tpu.dot_dimension_numbers<[1], [1], [0], [0], [0, 0, 1, 0], [], []>} : vector<8x8xbf16>, vector<8x8xbf16>, vector<8x8xf32> -> vector<8x8xf32>
    %cst_9 = arith.constant 0.353553385 : f32
    %9 = vector.broadcast %cst_9 : f32 to vector<8x8xf32>
    %10 = arith.mulf %8, %9 : vector<8x8xf32>
    %11 = vector.broadcast %1 : vector<1x8xf32> to vector<8x8xf32>
    %12 = arith.addf %10, %11 : vector<8x8xf32>
    %cst_10 = arith.constant dense<0xFF800000> : vector<8xf32>
    %13 = vector.multi_reduction <maximumf>, %12, %cst_10 [1] : vector<8x8xf32> to vector<8xf32>
    %14 = vector.shape_cast %13 : vector<8xf32> to vector<8x1xf32>
    %15 = vector.broadcast %14 : vector<8x1xf32> to vector<8x8xf32>
    %16 = arith.subf %12, %15 : vector<8x8xf32>
    %17 = math.exp %16 : vector<8x8xf32>
    %cst_11 = arith.constant dense<0.000000e+00> : vector<8xf32>
    %18 = vector.multi_reduction <add>, %17, %cst_11 [1] : vector<8x8xf32> to vector<8xf32>
    %19 = vector.shape_cast %18 : vector<8xf32> to vector<8x1xf32>
    %20 = vector.broadcast %19 : vector<8x1xf32> to vector<8x8xf32>
    %21 = arith.divf %17, %20 : vector<8x8xf32>
    %22 = arith.truncf %21 : vector<8x8xf32> to vector<8x8xbf16>
    %cst_12 = arith.constant dense<0.000000e+00> : vector<8x8xf32>
    %23 = tpu.matmul %22, %7, %cst_12 {dimension_numbers = #tpu.dot_dimension_numbers<[1], [0], [0], [1], [0, 0, 1, 1], [], []>} : vector<8x8xbf16>, vector<8x8xbf16>, vector<8x8xf32> -> vector<8x8xf32>
    %24 = arith.truncf %23 : vector<8x8xf32> to vector<8x8xbf16>
    %c0_13 = arith.constant 0 : index
    %c0_14 = arith.constant 0 : index
    %c0_15 = arith.constant 0 : index
    %25 = vector.load %arg3[%c0_13, %c0_14, %c0_15] : memref<1x8x32xbf16, #tpu.memory_space<vmem>>, vector<1x8x8xbf16>
    %26 = vector.shape_cast %25 : vector<1x8x8xbf16> to vector<8x8xbf16>
    %27 = vector.shape_cast %24 : vector<8x8xbf16> to vector<1x8x8xbf16>
    tpu.vector_store %arg3[%c0_13, %c0_14, %c0_15], %27 {strides = array<i32>} : memref<1x8x32xbf16, #tpu.memory_space<vmem>>, vector<1x8x8xbf16>,
    %c0_16 = arith.constant 0 : index
    %c0_17 = arith.constant 0 : index
    %c0_18 = arith.constant 0 : index
    %c0_19 = arith.constant 0 : index
    %28 = vector.load %arg4[%c0_16, %c0_17, %c0_18, %c0_19] : memref<1x4x8x8xf32, #tpu.memory_space<vmem>>, vector<1x1x8x8xf32>
    %29 = vector.shape_cast %28 : vector<1x1x8x8xf32> to vector<8x8xf32>
    %30 = vector.shape_cast %21 : vector<8x8xf32> to vector<1x1x8x8xf32>
    tpu.vector_store %arg4[%c0_16, %c0_17, %c0_18, %c0_19], %30 {strides = array<i32>} : memref<1x4x8x8xf32, #tpu.memory_space<vmem>>, vector<1x1x8x8xf32>,
    %c0_20 = arith.constant 0 : index
    %c0_21 = arith.constant 0 : index
    %c8 = arith.constant 8 : index
    %31 = vector.load %arg1[%c0_20, %c0_21, %c8] : memref<1x8x96xbf16, #tpu.memory_space<vmem>>, vector<1x8x8xbf16>
    %32 = vector.shape_cast %31 : vector<1x8x8xbf16> to vector<8x8xbf16>
    %c0_22 = arith.constant 0 : index
    %c0_23 = arith.constant 0 : index
    %c40 = arith.constant 40 : index
    %33 = vector.load %arg1[%c0_22, %c0_23, %c40] : memref<1x8x96xbf16, #tpu.memory_space<vmem>>, vector<1x8x8xbf16>
    %34 = vector.shape_cast %33 : vector<1x8x8xbf16> to vector<8x8xbf16>
    %c0_24 = arith.constant 0 : index
    %c0_25 = arith.constant 0 : index
    %c72 = arith.constant 72 : index
    %35 = vector.load %arg1[%c0_24, %c0_25, %c72] : memref<1x8x96xbf16, #tpu.memory_space<vmem>>, vector<1x8x8xbf16>
    %36 = vector.shape_cast %35 : vector<1x8x8xbf16> to vector<8x8xbf16>
    %cst_26 = arith.constant dense<0.000000e+00> : vector<8x8xf32>
    %37 = tpu.matmul %32, %34, %cst_26 {dimension_numbers = #tpu.dot_dimension_numbers<[1], [1], [0], [0], [0, 0, 1, 0], [], []>} : vector<8x8xbf16>, vector<8x8xbf16>, vector<8x8xf32> -> vector<8x8xf32>
    %cst_27 = arith.constant 0.353553385 : f32
    %38 = vector.broadcast %cst_27 : f32 to vector<8x8xf32>
    %39 = arith.mulf %37, %38 : vector<8x8xf32>
    %40 = vector.broadcast %1 : vector<1x8xf32> to vector<8x8xf32>
    %41 = arith.addf %39, %40 : vector<8x8xf32>
    %cst_28 = arith.constant dense<0xFF800000> : vector<8xf32>
    %42 = vector.multi_reduction <maximumf>, %41, %cst_28 [1] : vector<8x8xf32> to vector<8xf32>
    %43 = vector.shape_cast %42 : vector<8xf32> to vector<8x1xf32>
    %44 = vector.broadcast %43 : vector<8x1xf32> to vector<8x8xf32>
    %45 = arith.subf %41, %44 : vector<8x8xf32>
    %46 = math.exp %45 : vector<8x8xf32>
    %cst_29 = arith.constant dense<0.000000e+00> : vector<8xf32>
    %47 = vector.multi_reduction <add>, %46, %cst_29 [1] : vector<8x8xf32> to vector<8xf32>
    %48 = vector.shape_cast %47 : vector<8xf32> to vector<8x1xf32>
    %49 = vector.broadcast %48 : vector<8x1xf32> to vector<8x8xf32>
    %50 = arith.divf %46, %49 : vector<8x8xf32>
    %51 = arith.truncf %50 : vector<8x8xf32> to vector<8x8xbf16>
    %cst_30 = arith.constant dense<0.000000e+00> : vector<8x8xf32>
    %52 = tpu.matmul %51, %36, %cst_30 {dimension_numbers = #tpu.dot_dimension_numbers<[1], [0], [0], [1], [0, 0, 1, 1], [], []>} : vector<8x8xbf16>, vector<8x8xbf16>, vector<8x8xf32> -> vector<8x8xf32>
    %53 = arith.truncf %52 : vector<8x8xf32> to vector<8x8xbf16>
    %c0_31 = arith.constant 0 : index
    %c0_32 = arith.constant 0 : index
    %c8_33 = arith.constant 8 : index
    %54 = vector.load %arg3[%c0_31, %c0_32, %c8_33] : memref<1x8x32xbf16, #tpu.memory_space<vmem>>, vector<1x8x8xbf16>
    %55 = vector.shape_cast %54 : vector<1x8x8xbf16> to vector<8x8xbf16>
    %56 = vector.shape_cast %53 : vector<8x8xbf16> to vector<1x8x8xbf16>
    tpu.vector_store %arg3[%c0_31, %c0_32, %c8_33], %56 {strides = array<i32>} : memref<1x8x32xbf16, #tpu.memory_space<vmem>>, vector<1x8x8xbf16>,
    %c0_34 = arith.constant 0 : index
    %c1 = arith.constant 1 : index
    %c0_35 = arith.constant 0 : index
    %c0_36 = arith.constant 0 : index
    %57 = vector.load %arg4[%c0_34, %c1, %c0_35, %c0_36] : memref<1x4x8x8xf32, #tpu.memory_space<vmem>>, vector<1x1x8x8xf32>
    %58 = vector.shape_cast %57 : vector<1x1x8x8xf32> to vector<8x8xf32>
    %59 = vector.shape_cast %50 : vector<8x8xf32> to vector<1x1x8x8xf32>
    tpu.vector_store %arg4[%c0_34, %c1, %c0_35, %c0_36], %59 {strides = array<i32>} : memref<1x4x8x8xf32, #tpu.memory_space<vmem>>, vector<1x1x8x8xf32>,
    %c0_37 = arith.constant 0 : index
    %c0_38 = arith.constant 0 : index
    %c16 = arith.constant 16 : index
    %60 = vector.load %arg1[%c0_37, %c0_38, %c16] : memref<1x8x96xbf16, #tpu.memory_space<vmem>>, vector<1x8x8xbf16>
    %61 = vector.shape_cast %60 : vector<1x8x8xbf16> to vector<8x8xbf16>
    %c0_39 = arith.constant 0 : index
    %c0_40 = arith.constant 0 : index
    %c48 = arith.constant 48 : index
    %62 = vector.load %arg1[%c0_39, %c0_40, %c48] : memref<1x8x96xbf16, #tpu.memory_space<vmem>>, vector<1x8x8xbf16>
    %63 = vector.shape_cast %62 : vector<1x8x8xbf16> to vector<8x8xbf16>
    %c0_41 = arith.constant 0 : index
    %c0_42 = arith.constant 0 : index
    %c80 = arith.constant 80 : index
    %64 = vector.load %arg1[%c0_41, %c0_42, %c80] : memref<1x8x96xbf16, #tpu.memory_space<vmem>>, vector<1x8x8xbf16>
    %65 = vector.shape_cast %64 : vector<1x8x8xbf16> to vector<8x8xbf16>
    %cst_43 = arith.constant dense<0.000000e+00> : vector<8x8xf32>
    %66 = tpu.matmul %61, %63, %cst_43 {dimension_numbers = #tpu.dot_dimension_numbers<[1], [1], [0], [0], [0, 0, 1, 0], [], []>} : vector<8x8xbf16>, vector<8x8xbf16>, vector<8x8xf32> -> vector<8x8xf32>
    %cst_44 = arith.constant 0.353553385 : f32
    %67 = vector.broadcast %cst_44 : f32 to vector<8x8xf32>
    %68 = arith.mulf %66, %67 : vector<8x8xf32>
    %69 = vector.broadcast %1 : vector<1x8xf32> to vector<8x8xf32>
    %70 = arith.addf %68, %69 : vector<8x8xf32>
    %cst_45 = arith.constant dense<0xFF800000> : vector<8xf32>
    %71 = vector.multi_reduction <maximumf>, %70, %cst_45 [1] : vector<8x8xf32> to vector<8xf32>
    %72 = vector.shape_cast %71 : vector<8xf32> to vector<8x1xf32>
    %73 = vector.broadcast %72 : vector<8x1xf32> to vector<8x8xf32>
    %74 = arith.subf %70, %73 : vector<8x8xf32>
    %75 = math.exp %74 : vector<8x8xf32>
    %cst_46 = arith.constant dense<0.000000e+00> : vector<8xf32>
    %76 = vector.multi_reduction <add>, %75, %cst_46 [1] : vector<8x8xf32> to vector<8xf32>
    %77 = vector.shape_cast %76 : vector<8xf32> to vector<8x1xf32>
    %78 = vector.broadcast %77 : vector<8x1xf32> to vector<8x8xf32>
    %79 = arith.divf %75, %78 : vector<8x8xf32>
    %80 = arith.truncf %79 : vector<8x8xf32> to vector<8x8xbf16>
    %cst_47 = arith.constant dense<0.000000e+00> : vector<8x8xf32>
    %81 = tpu.matmul %80, %65, %cst_47 {dimension_numbers = #tpu.dot_dimension_numbers<[1], [0], [0], [1], [0, 0, 1, 1], [], []>} : vector<8x8xbf16>, vector<8x8xbf16>, vector<8x8xf32> -> vector<8x8xf32>
    %82 = arith.truncf %81 : vector<8x8xf32> to vector<8x8xbf16>
    %c0_48 = arith.constant 0 : index
    %c0_49 = arith.constant 0 : index
    %c16_50 = arith.constant 16 : index
    %83 = vector.load %arg3[%c0_48, %c0_49, %c16_50] : memref<1x8x32xbf16, #tpu.memory_space<vmem>>, vector<1x8x8xbf16>
    %84 = vector.shape_cast %83 : vector<1x8x8xbf16> to vector<8x8xbf16>
    %85 = vector.shape_cast %82 : vector<8x8xbf16> to vector<1x8x8xbf16>
    tpu.vector_store %arg3[%c0_48, %c0_49, %c16_50], %85 {strides = array<i32>} : memref<1x8x32xbf16, #tpu.memory_space<vmem>>, vector<1x8x8xbf16>,
    %c0_51 = arith.constant 0 : index
    %c2 = arith.constant 2 : index
    %c0_52 = arith.constant 0 : index
    %c0_53 = arith.constant 0 : index
    %86 = vector.load %arg4[%c0_51, %c2, %c0_52, %c0_53] : memref<1x4x8x8xf32, #tpu.memory_space<vmem>>, vector<1x1x8x8xf32>
    %87 = vector.shape_cast %86 : vector<1x1x8x8xf32> to vector<8x8xf32>
    %88 = vector.shape_cast %79 : vector<8x8xf32> to vector<1x1x8x8xf32>
    tpu.vector_store %arg4[%c0_51, %c2, %c0_52, %c0_53], %88 {strides = array<i32>} : memref<1x4x8x8xf32, #tpu.memory_space<vmem>>, vector<1x1x8x8xf32>,
    %c0_54 = arith.constant 0 : index
    %c0_55 = arith.constant 0 : index
    %c24 = arith.constant 24 : index
    %89 = vector.load %arg1[%c0_54, %c0_55, %c24] : memref<1x8x96xbf16, #tpu.memory_space<vmem>>, vector<1x8x8xbf16>
    %90 = vector.shape_cast %89 : vector<1x8x8xbf16> to vector<8x8xbf16>
    %c0_56 = arith.constant 0 : index
    %c0_57 = arith.constant 0 : index
    %c56 = arith.constant 56 : index
    %91 = vector.load %arg1[%c0_56, %c0_57, %c56] : memref<1x8x96xbf16, #tpu.memory_space<vmem>>, vector<1x8x8xbf16>
    %92 = vector.shape_cast %91 : vector<1x8x8xbf16> to vector<8x8xbf16>
    %c0_58 = arith.constant 0 : index
    %c0_59 = arith.constant 0 : index
    %c88 = arith.constant 88 : index
    %93 = vector.load %arg1[%c0_58, %c0_59, %c88] : memref<1x8x96xbf16, #tpu.memory_space<vmem>>, vector<1x8x8xbf16>
    %94 = vector.shape_cast %93 : vector<1x8x8xbf16> to vector<8x8xbf16>
    %cst_60 = arith.constant dense<0.000000e+00> : vector<8x8xf32>
    %95 = tpu.matmul %90, %92, %cst_60 {dimension_numbers = #tpu.dot_dimension_numbers<[1], [1], [0], [0], [0, 0, 1, 0], [], []>} : vector<8x8xbf16>, vector<8x8xbf16>, vector<8x8xf32> -> vector<8x8xf32>
    %cst_61 = arith.constant 0.353553385 : f32
    %96 = vector.broadcast %cst_61 : f32 to vector<8x8xf32>
    %97 = arith.mulf %95, %96 : vector<8x8xf32>
    %98 = vector.broadcast %1 : vector<1x8xf32> to vector<8x8xf32>
    %99 = arith.addf %97, %98 : vector<8x8xf32>
    %cst_62 = arith.constant dense<0xFF800000> : vector<8xf32>
    %100 = vector.multi_reduction <maximumf>, %99, %cst_62 [1] : vector<8x8xf32> to vector<8xf32>
    %101 = vector.shape_cast %100 : vector<8xf32> to vector<8x1xf32>
    %102 = vector.broadcast %101 : vector<8x1xf32> to vector<8x8xf32>
    %103 = arith.subf %99, %102 : vector<8x8xf32>
    %104 = math.exp %103 : vector<8x8xf32>
    %cst_63 = arith.constant dense<0.000000e+00> : vector<8xf32>
    %105 = vector.multi_reduction <add>, %104, %cst_63 [1] : vector<8x8xf32> to vector<8xf32>
    %106 = vector.shape_cast %105 : vector<8xf32> to vector<8x1xf32>
    %107 = vector.broadcast %106 : vector<8x1xf32> to vector<8x8xf32>
    %108 = arith.divf %104, %107 : vector<8x8xf32>
    %109 = arith.truncf %108 : vector<8x8xf32> to vector<8x8xbf16>
    %cst_64 = arith.constant dense<0.000000e+00> : vector<8x8xf32>
    %110 = tpu.matmul %109, %94, %cst_64 {dimension_numbers = #tpu.dot_dimension_numbers<[1], [0], [0], [1], [0, 0, 1, 1], [], []>} : vector<8x8xbf16>, vector<8x8xbf16>, vector<8x8xf32> -> vector<8x8xf32>
    %111 = arith.truncf %110 : vector<8x8xf32> to vector<8x8xbf16>
    %c0_65 = arith.constant 0 : index
    %c0_66 = arith.constant 0 : index
    %c24_67 = arith.constant 24 : index
    %112 = vector.load %arg3[%c0_65, %c0_66, %c24_67] : memref<1x8x32xbf16, #tpu.memory_space<vmem>>, vector<1x8x8xbf16>
    %113 = vector.shape_cast %112 : vector<1x8x8xbf16> to vector<8x8xbf16>
    %114 = vector.shape_cast %111 : vector<8x8xbf16> to vector<1x8x8xbf16>
    tpu.vector_store %arg3[%c0_65, %c0_66, %c24_67], %114 {strides = array<i32>} : memref<1x8x32xbf16, #tpu.memory_space<vmem>>, vector<1x8x8xbf16>,
    %c0_68 = arith.constant 0 : index
    %c3 = arith.constant 3 : index
    %c0_69 = arith.constant 0 : index
    %c0_70 = arith.constant 0 : index
    %115 = vector.load %arg4[%c0_68, %c3, %c0_69, %c0_70] : memref<1x4x8x8xf32, #tpu.memory_space<vmem>>, vector<1x1x8x8xf32>
    %116 = vector.shape_cast %115 : vector<1x1x8x8xf32> to vector<8x8xf32>
    %117 = vector.shape_cast %108 : vector<8x8xf32> to vector<1x1x8x8xf32>
    tpu.vector_store %arg4[%c0_68, %c3, %c0_69, %c0_70], %117 {strides = array<i32>} : memref<1x4x8x8xf32, #tpu.memory_space<vmem>>, vector<1x1x8x8xf32>,
    return
  }
  func.func @transform_0(%arg0: i32) -> (i32, i32, i32) {
    %c0_i32 = arith.constant 0 : i32
    %c0_i32_0 = arith.constant 0 : i32
    %c0_i32_1 = arith.constant 0 : i32
    return %arg0, %c0_i32, %c0_i32_0 : i32, i32, i32
  }
  func.func @transform_1(%arg0: i32) -> (i32, i32, i32) {
    %c0_i32 = arith.constant 0 : i32
    %c0_i32_0 = arith.constant 0 : i32
    %c0_i32_1 = arith.constant 0 : i32
    return %arg0, %c0_i32, %c0_i32_0 : i32, i32, i32
  }
  func.func @transform_2(%arg0: i32) -> (i32, i32, i32) {
    %c0_i32 = arith.constant 0 : i32
    %c0_i32_0 = arith.constant 0 : i32
    %c0_i32_1 = arith.constant 0 : i32
    return %arg0, %c0_i32, %c0_i32_0 : i32, i32, i32
  }
  func.func @transform_3(%arg0: i32) -> (i32, i32, i32, i32) {
    %c0_i32 = arith.constant 0 : i32
    %c0_i32_0 = arith.constant 0 : i32
    %c0_i32_1 = arith.constant 0 : i32
    %c0_i32_2 = arith.constant 0 : i32
    return %arg0, %c0_i32, %c0_i32_0, %c0_i32_1 : i32, i32, i32, i32
  }
}

module attributes {stable_mosaic.version = 11 : i64} {
  func.func @_matmul_bias_kernel(%arg0: i32, %arg1: i32, %arg2: i32, %arg3: memref<16x32xbf16, #tpu.memory_space<vmem>>, %arg4: memref<32x64xbf16, #tpu.memory_space<vmem>>, %arg5: memref<1x64xf32, #tpu.memory_space<vmem>>, %arg6: memref<16x64xbf16, #tpu.memory_space<vmem>>, %arg7: memref<16x64xf32, #tpu.memory_space<vmem>>) attributes {dimension_semantics = [#tpu.dimension_semantics<parallel>, #tpu.dimension_semantics<parallel>, #tpu.dimension_semantics<arbitrary>], iteration_bounds = array<i64: 1, 1, 1>, scalar_prefetch = 0 : i64, scratch_operands = 1 : i64, tpu.core_type = #tpu.core_type<tc>, window_params = [{transform_indices = @transform_0, window_bounds = array<i64: 16, 32>}, {transform_indices = @transform_1, window_bounds = array<i64: 32, 64>}, {transform_indices = @transform_2, window_bounds = array<i64: 1, 64>}, {transform_indices = @transform_3, window_bounds = array<i64: 16, 64>}]} {
    %c0_i32 = arith.constant 0 : i32
    %0 = arith.cmpi eq, %arg2, %c0_i32 : i32
    %1 = arith.extui %0 : i1 to i32
    %c0_i32_0 = arith.constant 0 : i32
    %2 = arith.cmpi ne, %1, %c0_i32_0 : i32
    scf.if %2 {
      %cst_10 = arith.constant 0.000000e+00 : f32
      %12 = vector.broadcast %cst_10 : f32 to vector<16x64xf32>
      %c0_11 = arith.constant 0 : index
      %c0_12 = arith.constant 0 : index
      %13 = vector.load %arg7[%c0_11, %c0_12] : memref<16x64xf32, #tpu.memory_space<vmem>>, vector<16x64xf32>
      tpu.vector_store %arg7[%c0_11, %c0_12], %12 {strides = array<i32>} : memref<16x64xf32, #tpu.memory_space<vmem>>, vector<16x64xf32>,
    } else {
    }
    %c0 = arith.constant 0 : index
    %c0_1 = arith.constant 0 : index
    %3 = vector.load %arg7[%c0, %c0_1] : memref<16x64xf32, #tpu.memory_space<vmem>>, vector<16x64xf32>
    %c0_2 = arith.constant 0 : index
    %c0_3 = arith.constant 0 : index
    %4 = vector.load %arg3[%c0_2, %c0_3] : memref<16x32xbf16, #tpu.memory_space<vmem>>, vector<16x32xbf16>
    %c0_4 = arith.constant 0 : index
    %c0_5 = arith.constant 0 : index
    %5 = vector.load %arg4[%c0_4, %c0_5] : memref<32x64xbf16, #tpu.memory_space<vmem>>, vector<32x64xbf16>
    %cst = arith.constant dense<0.000000e+00> : vector<16x64xf32>
    %6 = tpu.matmul %4, %5, %cst {dimension_numbers = #tpu.dot_dimension_numbers<[1], [0], [0], [1], [0, 0, 1, 1], [], []>} : vector<16x32xbf16>, vector<32x64xbf16>, vector<16x64xf32> -> vector<16x64xf32>
    %7 = arith.addf %3, %6 : vector<16x64xf32>
    %c0_6 = arith.constant 0 : index
    %c0_7 = arith.constant 0 : index
    %8 = vector.load %arg7[%c0_6, %c0_7] : memref<16x64xf32, #tpu.memory_space<vmem>>, vector<16x64xf32>
    tpu.vector_store %arg7[%c0_6, %c0_7], %7 {strides = array<i32>} : memref<16x64xf32, #tpu.memory_space<vmem>>, vector<16x64xf32>,
    %c0_i32_8 = arith.constant 0 : i32
    %9 = arith.cmpi eq, %arg2, %c0_i32_8 : i32
    %10 = arith.extui %9 : i1 to i32
    %c0_i32_9 = arith.constant 0 : i32
    %11 = arith.cmpi ne, %10, %c0_i32_9 : i32
    scf.if %11 {
      %c0_10 = arith.constant 0 : index
      %c0_11 = arith.constant 0 : index
      %12 = vector.load %arg7[%c0_10, %c0_11] : memref<16x64xf32, #tpu.memory_space<vmem>>, vector<16x64xf32>
      %c0_12 = arith.constant 0 : index
      %c0_13 = arith.constant 0 : index
      %13 = vector.load %arg5[%c0_12, %c0_13] : memref<1x64xf32, #tpu.memory_space<vmem>>, vector<1x64xf32>
      %14 = vector.broadcast %13 : vector<1x64xf32> to vector<16x64xf32>
      %15 = arith.addf %12, %14 : vector<16x64xf32>
      %cst_14 = arith.constant 0.000000e+00 : f32
      %16 = vector.broadcast %cst_14 : f32 to vector<16x64xf32>
      %17 = arith.maximumf %15, %16 : vector<16x64xf32>
      %18 = arith.truncf %17 : vector<16x64xf32> to vector<16x64xbf16>
      %c0_15 = arith.constant 0 : index
      %c0_16 = arith.constant 0 : index
      %19 = vector.load %arg6[%c0_15, %c0_16] : memref<16x64xbf16, #tpu.memory_space<vmem>>, vector<16x64xbf16>
      tpu.vector_store %arg6[%c0_15, %c0_16], %18 {strides = array<i32>} : memref<16x64xbf16, #tpu.memory_space<vmem>>, vector<16x64xbf16>,
    } else {
    }
    return
  }
  func.func @transform_0(%arg0: i32, %arg1: i32, %arg2: i32) -> (i32, i32) {
    %c0_i32 = arith.constant 0 : i32
    return %arg0, %arg2 : i32, i32
  }
  func.func @transform_1(%arg0: i32, %arg1: i32, %arg2: i32) -> (i32, i32) {
    %c0_i32 = arith.constant 0 : i32
    return %arg2, %arg1 : i32, i32
  }
  func.func @transform_2(%arg0: i32, %arg1: i32, %arg2: i32) -> (i32, i32) {
    %c0_i32 = arith.constant 0 : i32
    %c0_i32_0 = arith.constant 0 : i32
    return %c0_i32, %arg1 : i32, i32
  }
  func.func @transform_3(%arg0: i32, %arg1: i32, %arg2: i32) -> (i32, i32) {
    %c0_i32 = arith.constant 0 : i32
    return %arg0, %arg1 : i32, i32
  }
}

module attributes {stable_mosaic.version = 11 : i64} {
  func.func @_matmul_residual_ln_kernel(%arg0: i32, %arg1: i32, %arg2: memref<16x64xbf16, #tpu.memory_space<vmem>>, %arg3: memref<64x32xbf16, #tpu.memory_space<vmem>>, %arg4: memref<1x32xf32, #tpu.memory_space<vmem>>, %arg5: memref<16x32xbf16, #tpu.memory_space<vmem>>, %arg6: memref<1x32xf32, #tpu.memory_space<vmem>>, %arg7: memref<1x32xf32, #tpu.memory_space<vmem>>, %arg8: memref<16x32xbf16, #tpu.memory_space<vmem>>, %arg9: memref<16x32xf32, #tpu.memory_space<vmem>>) attributes {dimension_semantics = [#tpu.dimension_semantics<parallel>, #tpu.dimension_semantics<arbitrary>], iteration_bounds = array<i64: 1, 1>, scalar_prefetch = 0 : i64, scratch_operands = 1 : i64, tpu.core_type = #tpu.core_type<tc>, window_params = [{transform_indices = @transform_0, window_bounds = array<i64: 16, 64>}, {transform_indices = @transform_1, window_bounds = array<i64: 64, 32>}, {pipeline_mode = #tpu.pipeline_mode<synchronous>, transform_indices = @transform_2, window_bounds = array<i64: 1, 32>}, {transform_indices = @transform_3, window_bounds = array<i64: 16, 32>}, {pipeline_mode = #tpu.pipeline_mode<synchronous>, transform_indices = @transform_4, window_bounds = array<i64: 1, 32>}, {pipeline_mode = #tpu.pipeline_mode<synchronous>, transform_indices = @transform_5, window_bounds = array<i64: 1, 32>}, {transform_indices = @transform_6, window_bounds = array<i64: 16, 32>}]} {
    %c0_i32 = arith.constant 0 : i32
    %0 = arith.cmpi eq, %arg1, %c0_i32 : i32
    %1 = arith.extui %0 : i1 to i32
    %c0_i32_0 = arith.constant 0 : i32
    %2 = arith.cmpi ne, %1, %c0_i32_0 : i32
    scf.if %2 {
      %cst_10 = arith.constant 0.000000e+00 : f32
      %12 = vector.broadcast %cst_10 : f32 to vector<16x32xf32>
      %c0_11 = arith.constant 0 : index
      %c0_12 = arith.constant 0 : index
      %13 = vector.load %arg9[%c0_11, %c0_12] : memref<16x32xf32, #tpu.memory_space<vmem>>, vector<16x32xf32>
      tpu.vector_store %arg9[%c0_11, %c0_12], %12 {strides = array<i32>} : memref<16x32xf32, #tpu.memory_space<vmem>>, vector<16x32xf32>,
    } else {
    }
    %c0 = arith.constant 0 : index
    %c0_1 = arith.constant 0 : index
    %3 = vector.load %arg9[%c0, %c0_1] : memref<16x32xf32, #tpu.memory_space<vmem>>, vector<16x32xf32>
    %c0_2 = arith.constant 0 : index
    %c0_3 = arith.constant 0 : index
    %4 = vector.load %arg2[%c0_2, %c0_3] : memref<16x64xbf16, #tpu.memory_space<vmem>>, vector<16x64xbf16>
    %c0_4 = arith.constant 0 : index
    %c0_5 = arith.constant 0 : index
    %5 = vector.load %arg3[%c0_4, %c0_5] : memref<64x32xbf16, #tpu.memory_space<vmem>>, vector<64x32xbf16>
    %cst = arith.constant dense<0.000000e+00> : vector<16x32xf32>
    %6 = tpu.matmul %4, %5, %cst {dimension_numbers = #tpu.dot_dimension_numbers<[1], [0], [0], [1], [0, 0, 1, 1], [], []>} : vector<16x64xbf16>, vector<64x32xbf16>, vector<16x32xf32> -> vector<16x32xf32>
    %7 = arith.addf %3, %6 : vector<16x32xf32>
    %c0_6 = arith.constant 0 : index
    %c0_7 = arith.constant 0 : index
    %8 = vector.load %arg9[%c0_6, %c0_7] : memref<16x32xf32, #tpu.memory_space<vmem>>, vector<16x32xf32>
    tpu.vector_store %arg9[%c0_6, %c0_7], %7 {strides = array<i32>} : memref<16x32xf32, #tpu.memory_space<vmem>>, vector<16x32xf32>,
    %c0_i32_8 = arith.constant 0 : i32
    %9 = arith.cmpi eq, %arg1, %c0_i32_8 : i32
    %10 = arith.extui %9 : i1 to i32
    %c0_i32_9 = arith.constant 0 : i32
    %11 = arith.cmpi ne, %10, %c0_i32_9 : i32
    scf.if %11 {
      %c0_10 = arith.constant 0 : index
      %c0_11 = arith.constant 0 : index
      %12 = vector.load %arg9[%c0_10, %c0_11] : memref<16x32xf32, #tpu.memory_space<vmem>>, vector<16x32xf32>
      %c0_12 = arith.constant 0 : index
      %c0_13 = arith.constant 0 : index
      %13 = vector.load %arg4[%c0_12, %c0_13] : memref<1x32xf32, #tpu.memory_space<vmem>>, vector<1x32xf32>
      %14 = vector.broadcast %13 : vector<1x32xf32> to vector<16x32xf32>
      %15 = arith.addf %12, %14 : vector<16x32xf32>
      %c0_14 = arith.constant 0 : index
      %c0_15 = arith.constant 0 : index
      %16 = vector.load %arg5[%c0_14, %c0_15] : memref<16x32xbf16, #tpu.memory_space<vmem>>, vector<16x32xbf16>
      %17 = arith.extf %16 : vector<16x32xbf16> to vector<16x32xf32>
      %18 = arith.addf %15, %17 : vector<16x32xf32>
      %cst_16 = arith.constant dense<0.000000e+00> : vector<16xf32>
      %19 = vector.multi_reduction <add>, %18, %cst_16 [1] : vector<16x32xf32> to vector<16xf32>
      %20 = vector.shape_cast %19 : vector<16xf32> to vector<16x1xf32>
      %cst_17 = arith.constant 3.200000e+01 : f32
      %21 = vector.broadcast %cst_17 : f32 to vector<16x1xf32>
      %22 = arith.divf %20, %21 : vector<16x1xf32>
      %23 = vector.broadcast %22 : vector<16x1xf32> to vector<16x32xf32>
      %24 = arith.subf %18, %23 : vector<16x32xf32>
      %25 = arith.mulf %24, %24 : vector<16x32xf32>
      %cst_18 = arith.constant dense<0.000000e+00> : vector<16xf32>
      %26 = vector.multi_reduction <add>, %25, %cst_18 [1] : vector<16x32xf32> to vector<16xf32>
      %27 = vector.shape_cast %26 : vector<16xf32> to vector<16x1xf32>
      %cst_19 = arith.constant 3.200000e+01 : f32
      %28 = vector.broadcast %cst_19 : f32 to vector<16x1xf32>
      %29 = arith.divf %27, %28 : vector<16x1xf32>
      %30 = vector.broadcast %22 : vector<16x1xf32> to vector<16x32xf32>
      %31 = arith.subf %18, %30 : vector<16x32xf32>
      %cst_20 = arith.constant 9.99999974E-6 : f32
      %32 = vector.broadcast %cst_20 : f32 to vector<16x1xf32>
      %33 = arith.addf %29, %32 : vector<16x1xf32>
      %34 = math.rsqrt %33 : vector<16x1xf32>
      %35 = vector.broadcast %34 : vector<16x1xf32> to vector<16x32xf32>
      %36 = arith.mulf %31, %35 : vector<16x32xf32>
      %c0_21 = arith.constant 0 : index
      %c0_22 = arith.constant 0 : index
      %37 = vector.load %arg6[%c0_21, %c0_22] : memref<1x32xf32, #tpu.memory_space<vmem>>, vector<1x32xf32>
      %38 = vector.broadcast %37 : vector<1x32xf32> to vector<16x32xf32>
      %39 = arith.mulf %36, %38 : vector<16x32xf32>
      %c0_23 = arith.constant 0 : index
      %c0_24 = arith.constant 0 : index
      %40 = vector.load %arg7[%c0_23, %c0_24] : memref<1x32xf32, #tpu.memory_space<vmem>>, vector<1x32xf32>
      %41 = vector.broadcast %40 : vector<1x32xf32> to vector<16x32xf32>
      %42 = arith.addf %39, %41 : vector<16x32xf32>
      %43 = arith.truncf %42 : vector<16x32xf32> to vector<16x32xbf16>
      %c0_25 = arith.constant 0 : index
      %c0_26 = arith.constant 0 : index
      %44 = vector.load %arg8[%c0_25, %c0_26] : memref<16x32xbf16, #tpu.memory_space<vmem>>, vector<16x32xbf16>
      tpu.vector_store %arg8[%c0_25, %c0_26], %43 {strides = array<i32>} : memref<16x32xbf16, #tpu.memory_space<vmem>>, vector<16x32xbf16>,
    } else {
    }
    return
  }
  func.func @transform_0(%arg0: i32, %arg1: i32) -> (i32, i32) {
    %c0_i32 = arith.constant 0 : i32
    return %arg0, %arg1 : i32, i32
  }
  func.func @transform_1(%arg0: i32, %arg1: i32) -> (i32, i32) {
    %c0_i32 = arith.constant 0 : i32
    %c0_i32_0 = arith.constant 0 : i32
    return %arg1, %c0_i32 : i32, i32
  }
  func.func @transform_2(%arg0: i32, %arg1: i32) -> (i32, i32) {
    %c0_i32 = arith.constant 0 : i32
    %c0_i32_0 = arith.constant 0 : i32
    %c0_i32_1 = arith.constant 0 : i32
    return %c0_i32, %c0_i32_0 : i32, i32
  }
  func.func @transform_3(%arg0: i32, %arg1: i32) -> (i32, i32) {
    %c0_i32 = arith.constant 0 : i32
    %c0_i32_0 = arith.constant 0 : i32
    return %arg0, %c0_i32 : i32, i32
  }
  func.func @transform_4(%arg0: i32, %arg1: i32) -> (i32, i32) {
    %c0_i32 = arith.constant 0 : i32
    %c0_i32_0 = arith.constant 0 : i32
    %c0_i32_1 = arith.constant 0 : i32
    return %c0_i32, %c0_i32_0 : i32, i32
  }
  func.func @transform_5(%arg0: i32, %arg1: i32) -> (i32, i32) {
    %c0_i32 = arith.constant 0 : i32
    %c0_i32_0 = arith.constant 0 : i32
    %c0_i32_1 = arith.constant 0 : i32
    return %c0_i32, %c0_i32_0 : i32, i32
  }
  func.func @transform_6(%arg0: i32, %arg1: i32) -> (i32, i32) {
    %c0_i32 = arith.constant 0 : i32
    %c0_i32_0 = arith.constant 0 : i32
    return %arg0, %c0_i32 : i32, i32
  }
}

module attributes {stable_mosaic.version = 11 : i64} {
  func.func @_matmul_bias_kernel(%arg0: i32, %arg1: i32, %arg2: i32, %arg3: memref<16x32xbf16, #tpu.memory_space<vmem>>, %arg4: memref<32x16xbf16, #tpu.memory_space<vmem>>, %arg5: memref<1x16xf32, #tpu.memory_space<vmem>>, %arg6: memref<16x16xf32, #tpu.memory_space<vmem>>, %arg7: memref<16x16xf32, #tpu.memory_space<vmem>>) attributes {dimension_semantics = [#tpu.dimension_semantics<parallel>, #tpu.dimension_semantics<parallel>, #tpu.dimension_semantics<arbitrary>], iteration_bounds = array<i64: 1, 1, 1>, scalar_prefetch = 0 : i64, scratch_operands = 1 : i64, tpu.core_type = #tpu.core_type<tc>, window_params = [{transform_indices = @transform_0, window_bounds = array<i64: 16, 32>}, {transform_indices = @transform_1, window_bounds = array<i64: 32, 16>}, {transform_indices = @transform_2, window_bounds = array<i64: 1, 16>}, {transform_indices = @transform_3, window_bounds = array<i64: 16, 16>}]} {
    %c0_i32 = arith.constant 0 : i32
    %0 = arith.cmpi eq, %arg2, %c0_i32 : i32
    %1 = arith.extui %0 : i1 to i32
    %c0_i32_0 = arith.constant 0 : i32
    %2 = arith.cmpi ne, %1, %c0_i32_0 : i32
    scf.if %2 {
      %cst_10 = arith.constant 0.000000e+00 : f32
      %12 = vector.broadcast %cst_10 : f32 to vector<16x16xf32>
      %c0_11 = arith.constant 0 : index
      %c0_12 = arith.constant 0 : index
      %13 = vector.load %arg7[%c0_11, %c0_12] : memref<16x16xf32, #tpu.memory_space<vmem>>, vector<16x16xf32>
      tpu.vector_store %arg7[%c0_11, %c0_12], %12 {strides = array<i32>} : memref<16x16xf32, #tpu.memory_space<vmem>>, vector<16x16xf32>,
    } else {
    }
    %c0 = arith.constant 0 : index
    %c0_1 = arith.constant 0 : index
    %3 = vector.load %arg7[%c0, %c0_1] : memref<16x16xf32, #tpu.memory_space<vmem>>, vector<16x16xf32>
    %c0_2 = arith.constant 0 : index
    %c0_3 = arith.constant 0 : index
    %4 = vector.load %arg3[%c0_2, %c0_3] : memref<16x32xbf16, #tpu.memory_space<vmem>>, vector<16x32xbf16>
    %c0_4 = arith.constant 0 : index
    %c0_5 = arith.constant 0 : index
    %5 = vector.load %arg4[%c0_4, %c0_5] : memref<32x16xbf16, #tpu.memory_space<vmem>>, vector<32x16xbf16>
    %cst = arith.constant dense<0.000000e+00> : vector<16x16xf32>
    %6 = tpu.matmul %4, %5, %cst {dimension_numbers = #tpu.dot_dimension_numbers<[1], [0], [0], [1], [0, 0, 1, 1], [], []>} : vector<16x32xbf16>, vector<32x16xbf16>, vector<16x16xf32> -> vector<16x16xf32>
    %7 = arith.addf %3, %6 : vector<16x16xf32>
    %c0_6 = arith.constant 0 : index
    %c0_7 = arith.constant 0 : index
    %8 = vector.load %arg7[%c0_6, %c0_7] : memref<16x16xf32, #tpu.memory_space<vmem>>, vector<16x16xf32>
    tpu.vector_store %arg7[%c0_6, %c0_7], %7 {strides = array<i32>} : memref<16x16xf32, #tpu.memory_space<vmem>>, vector<16x16xf32>,
    %c0_i32_8 = arith.constant 0 : i32
    %9 = arith.cmpi eq, %arg2, %c0_i32_8 : i32
    %10 = arith.extui %9 : i1 to i32
    %c0_i32_9 = arith.constant 0 : i32
    %11 = arith.cmpi ne, %10, %c0_i32_9 : i32
    scf.if %11 {
      %c0_10 = arith.constant 0 : index
      %c0_11 = arith.constant 0 : index
      %12 = vector.load %arg7[%c0_10, %c0_11] : memref<16x16xf32, #tpu.memory_space<vmem>>, vector<16x16xf32>
      %c0_12 = arith.constant 0 : index
      %c0_13 = arith.constant 0 : index
      %13 = vector.load %arg5[%c0_12, %c0_13] : memref<1x16xf32, #tpu.memory_space<vmem>>, vector<1x16xf32>
      %14 = vector.broadcast %13 : vector<1x16xf32> to vector<16x16xf32>
      %15 = arith.addf %12, %14 : vector<16x16xf32>
      %c0_14 = arith.constant 0 : index
      %c0_15 = arith.constant 0 : index
      %16 = vector.load %arg6[%c0_14, %c0_15] : memref<16x16xf32, #tpu.memory_space<vmem>>, vector<16x16xf32>
      tpu.vector_store %arg6[%c0_14, %c0_15], %15 {strides = array<i32>} : memref<16x16xf32, #tpu.memory_space<vmem>>, vector<16x16xf32>,
    } else {
    }
    return
  }
  func.func @transform_0(%arg0: i32, %arg1: i32, %arg2: i32) -> (i32, i32) {
    %c0_i32 = arith.constant 0 : i32
    return %arg0, %arg2 : i32, i32
  }
  func.func @transform_1(%arg0: i32, %arg1: i32, %arg2: i32) -> (i32, i32) {
    %c0_i32 = arith.constant 0 : i32
    return %arg2, %arg1 : i32, i32
  }
  func.func @transform_2(%arg0: i32, %arg1: i32, %arg2: i32) -> (i32, i32) {
    %c0_i32 = arith.constant 0 : i32
    %c0_i32_0 = arith.constant 0 : i32
    return %c0_i32, %arg1 : i32, i32
  }
  func.func @transform_3(%arg0: i32, %arg1: i32, %arg2: i32) -> (i32, i32) {
    %c0_i32 = arith.constant 0 : i32
    return %arg0, %arg1 : i32, i32
  }
}

</mosaic_0001>

<bundles_post_ra>
// kernel: transformer_encoder_forward.13
= control target key start
LH: loop header
LB: loop body
LE: loop exit
PB: predicated region body
PF: predicated region fallthrough
CT: control target
= control target key end

     0   :  { %vm28_vm0 = vcmask 261120   ;;  %v220_v0 = vmov 0.0   ;;  %vm221_vm1 = vmmov 0   ;;  %vm178_vm2 = vcmask 257024   ;;  %s293_s1 = inlined_call_operand.vmem [shape: bf16[32,32], index: 1, kind: input, shape index: {}]   ;;  %s294_s0 = inlined_call_operand.vmem [shape: bf16[16,32], index: 0, kind: input, shape index: {}]   ;;  %s295_s3 = inlined_call_operand.vmem [shape: bf16[16,32], index: 3, kind: input, shape index: {}]   ;;  %s296_s2 = inlined_call_operand.vmem [shape: f32[1,32], index: 2, kind: input, shape index: {}]   ;;  %s297_s4 = inlined_call_operand.vmem [shape: f32[1,32], index: 4, kind: input, shape index: {}]   ;;  %s298_s5 = inlined_call_operand.vmem [shape: f32[1,32], index: 5, kind: input, shape index: {}]   ;;  %s299_s6 = inlined_call_operand.vmem [shape: bf16[16,32], index: 6, kind: output, shape index: {}]  }
   0x1   :  { %203 = vmatprep.subr.bf16.mxu0 %v220_v0  ;;  %v213_v1 = vld [vmem:[%s293_s1] sm:$0xff]   ;;  %207 = vmatprep.mubr.msk.bf16.mxu0 %vm221_vm1, %v220_v0  ;;  %29 = vst.msk [vmem:[#allocation2] sm:$0xff] %vm28_vm0, %v220_v0  ;;  %30 = vst.msk [vmem:[#allocation2 + $0x8] sm:$0xff] %vm28_vm0, %v220_v0  ;;  %v214_v2 = vld [vmem:[%s293_s1 + $0x8] sm:$0xff]  }
   0x2   :  { %204 = vmatpush3.bf16.msra.mxu0 %v213_v1  ;;  %v215_v3 = vld [vmem:[%s294_s0] sm:$0xff]  }
   0x3   :  { %205 = vmatprep.subr.bf16.mxu0 %v220_v0  ;;  %v197_v12 = vld [vmem:[%s295_s3] sm:$0xff]  }
   0x4   :  { %v189_v13 = vld [vmem:[%s296_s2] ss:$0 sm:$0xff]  ;;  %v198_v14 = vunpack.c.l.bf16 %v197_v12  ;;  %v199_v17 = vunpack.c.h.bf16 %v197_v12 }
   0x5   :  { %v190_v41 = vld [vmem:[%s297_s4] ss:$0 sm:$0xff] }
   0x6   :  { %206 = vmatpush3.bf16.msra.mxu0 %v214_v2  ;;  %v191_v43 = vld [vmem:[%s298_s5] ss:$0 sm:$0xff] }
   0x8   :  { %v31_v4 = vld [vmem:[#allocation2] sm:$0xff]  ;;  %v32_v6 = vld [vmem:[#allocation2 + $0x8] sm:$0xff] }
   0x9   :  { %208 = vmatmul.mubr.msk.bf16.vlgmr.msra.gmra.mrb[0].mxu0 %vm28_vm0, %v215_v3 }
  0xdc   :  { %v94_v5 = vpop.f32.mrb[0].mxu0 }
  0xdd   :  { %v101_v7 = vadd.f32 %v94_v5, %v31_v4  ;;  %v209_v8 = vpop.f32.mrb[1].mxu0 }
  0xde   :  { %v97_v9 = vpop.f32.mrb[2].mxu0 }
  0xdf   :  { %103 = vst.msk [vmem:[#allocation2] sm:$0xff] %vm28_vm0, %v101_v7  ;;  %v102_v10 = vadd.f32 %v97_v9, %v32_v6  ;;  %v210_v11 = vpop.f32.mrb[3].mxu0 }
  0xe1   :  { %104 = vst.msk [vmem:[#allocation2 + $0x8] sm:$0xff] %vm28_vm0, %v102_v10 }
  0xe6   :  { %v108_v15 = vld [vmem:[#allocation2] sm:$0xff] }
  0xe7   :  { %v117_v16 = vadd.f32 %v189_v13, %v108_v15 }
  0xe8   :  { %v109_v18 = vld [vmem:[#allocation2 + $0x8] sm:$0xff] }
  0xe9   :  { %v123_v19 = vadd.f32 %v198_v14, %v117_v16  ;;  %v118_v20 = vadd.f32 %v189_v13, %v109_v18 }
  0xeb   :  { %v125_v21 = vsel %vm28_vm0, %v123_v19, 0.0  ;;  %v124_v22 = vadd.f32 %v199_v17, %v118_v20 }
  0xec   :  { %126 = vadd.xlane.f32.xlu0 %v125_v21 }
  0xed   :  { %v128_v23 = vsel %vm28_vm0, %v124_v22, 0.0 }
  0xf0   :  { %129 = vadd.xlane.f32.xlu0 %v128_v23 }
 0x179   :  { %v127_v24 = vpop.xlane.xlu0 %126 }
 0x17a   :  { %v132_v25 = vmul.f32 0.03125, %v127_v24 }
 0x17c   :  { %v134_v26 = vsub.f32 %v123_v19, %v132_v25 }
 0x17d   :  { %v130_v27 = vpop.xlane.xlu0 %129 }
 0x17e   :  { %v133_v28 = vmul.f32 0.03125, %v130_v27  ;;  %v136_v29 = vmul.f32 %v134_v26, %v134_v26 }
 0x180   :  { %v135_v30 = vsub.f32 %v124_v22, %v133_v28  ;;  %v138_v31 = vsel %vm28_vm0, %v136_v29, 0.0 }
 0x181   :  { %139 = vadd.xlane.f32.xlu1 %v138_v31 }
 0x182   :  { %v137_v32 = vmul.f32 %v135_v30, %v135_v30 }
 0x184   :  { %v141_v33 = vsel %vm28_vm0, %v137_v32, 0.0 }
 0x185   :  { %142 = vadd.xlane.f32.xlu1 %v141_v33 }
 0x20e   :  { %v140_v34 = vpop.xlane.xlu1 %139 }
 0x20f   :  { %v144_v35 = vmul.f32 0.03125, %v140_v34 }
 0x211   :  { %v146_v36 = vadd.f32 1e-05, %v144_v35 }
 0x212   :  { %v143_v37 = vpop.xlane.xlu1 %142 }
 0x213   :  { %216 = vrsqrt.f32 %v146_v36  ;;  %v145_v38 = vmul.f32 0.03125, %v143_v37 }
 0x215   :  { %v147_v39 = vadd.f32 1e-05, %v145_v38 }
 0x217   :  { %218 = vrsqrt.f32 %v147_v39 }
 0x21d   :  { %v217_v40 = vpop.eup %216 }
 0x21e   :  { %v150_v42 = vmul.f32 %v217_v40, %v134_v26 }
 0x220   :  { %v159_v44 = vmul.f32 %v190_v41, %v150_v42 }
 0x221   :  { %v219_v45 = vpop.eup %218 }
 0x222   :  { %v168_v46 = vadd.f32 %v191_v43, %v159_v44  ;;  %v151_v47 = vmul.f32 %v219_v45, %v135_v30 }
 0x224   :  { %v194_v48 = vpack.c.bf16 %v168_v46, %v168_v46  ;;  %v160_v49 = vmul.f32 %v190_v41, %v151_v47 }
 0x226   :  { %179 = vst.msk [vmem:[%s299_s6] sm:$0xf] %vm178_vm2, %v194_v48  ;;  %v169_v50 = vadd.f32 %v191_v43, %v160_v49 }
 0x228   :  { %v195_v51 = vpack.c.bf16 %v169_v50, %v169_v50 }
 0x22a   :  { %180 = vst.msk [vmem:[%s299_s6 + $0x4] sm:$0xf] %vm178_vm2, %v195_v51 }

// kernel: transformer_encoder_forward.14
= control target key start
LH: loop header
LB: loop body
LE: loop exit
PB: predicated region body
PF: predicated region fallthrough
CT: control target
= control target key end

     0   :  { %vm19_vm0 = vcmask 523264   ;;  %v153_v0 = vmov 0.0   ;;  %vm154_vm1 = vmmov 0   ;;  %vm47_vm2 = vcmask 261120   ;;  %s197_s1 = inlined_call_operand.vmem [shape: bf16[32,64], index: 1, kind: input, shape index: {}]   ;;  %s198_s0 = inlined_call_operand.vmem [shape: bf16[16,32], index: 0, kind: input, shape index: {}]   ;;  %s199_s2 = inlined_call_operand.vmem [shape: f32[1,64], index: 2, kind: input, shape index: {}]   ;;  %s200_s3 = inlined_call_operand.vmem [shape: bf16[16,64], index: 3, kind: output, shape index: {}]  }
   0x1   :  { %140 = vmatprep.subr.bf16.mxu0 %v153_v0  ;;  %v150_v1 = vld [vmem:[%s197_s1] sm:$0xff]   ;;  %144 = vmatprep.mubr.msk.bf16.mxu0 %vm154_vm1, %v153_v0  ;;  %20 = vst.msk [vmem:[#allocation2] sm:$0xff] %vm19_vm0, %v153_v0  ;;  %21 = vst.msk [vmem:[#allocation2 + $0x8] sm:$0xff] %vm19_vm0, %v153_v0  ;;  %v151_v2 = vld [vmem:[%s197_s1 + $0x8] sm:$0xff]   ;;  %vm121_vm3 = vcmask 519168  }
   0x2   :  { %141 = vmatpush3.bf16.msra.mxu0 %v150_v1  ;;  %v152_v3 = vld [vmem:[%s198_s0] sm:$0xff]  }
   0x3   :  { %142 = vmatprep.subr.bf16.mxu0 %v153_v0  ;;  %v132_v12 = vld [vmem:[%s199_s2] ss:$0 sm:$0xff] }
   0x6   :  { %143 = vmatpush3.bf16.msra.mxu0 %v151_v2 }
   0x8   :  { %v22_v4 = vld [vmem:[#allocation2] sm:$0xff]  ;;  %v23_v6 = vld [vmem:[#allocation2 + $0x8] sm:$0xff] }
   0x9   :  { %145 = vmatmul.mubr.msk.bf16.vlgmr.msra.gmra.mrb[0].mxu0 %vm47_vm2, %v152_v3 }
  0xdc   :  { %v85_v5 = vpop.f32.mrb[0].mxu0 }
  0xdd   :  { %v92_v7 = vadd.f32 %v85_v5, %v22_v4  ;;  %v146_v8 = vpop.f32.mrb[1].mxu0 }
  0xde   :  { %v88_v9 = vpop.f32.mrb[2].mxu0 }
  0xdf   :  { %95 = vst.msk [vmem:[#allocation2] sm:$0xff] %vm19_vm0, %v92_v7  ;;  %v93_v10 = vadd.f32 %v88_v9, %v23_v6  ;;  %v147_v11 = vpop.f32.mrb[3].mxu0 }
  0xe1   :  { %96 = vst.msk [vmem:[#allocation2 + $0x8] sm:$0xff] %vm19_vm0, %v93_v10 }
  0xe6   :  { %v100_v13 = vld [vmem:[#allocation2] sm:$0xff] }
  0xe7   :  { %v109_v14 = vadd.f32 %v132_v12, %v100_v13 }
  0xe8   :  { %v101_v15 = vld [vmem:[#allocation2 + $0x8] sm:$0xff] }
  0xe9   :  { %v111_v16 = vmax.f32 %v109_v14, 0.0  ;;  %v110_v17 = vadd.f32 %v132_v12, %v101_v15 }
  0xeb   :  { %v135_v18 = vpack.c.bf16 %v111_v16, %v111_v16  ;;  %v112_v19 = vmax.f32 %v110_v17, 0.0 }
  0xed   :  { %122 = vst.msk [vmem:[%s200_s3] sm:$0xf] %vm121_vm3, %v135_v18  ;;  %v136_v20 = vpack.c.bf16 %v112_v19, %v112_v19 }
  0xef   :  { %123 = vst.msk [vmem:[%s200_s3 + $0x4] sm:$0xf] %vm121_vm3, %v136_v20 }

// kernel: transformer_encoder_forward.11
= control target key start
LH: loop header
LB: loop body
LE: loop exit
PB: predicated region body
PF: predicated region fallthrough
CT: control target
= control target key end

     0   :  { %vm19_vm0 = vcmask 785408   ;;  %v151_v0 = vmov 0.0   ;;  %vm152_vm1 = vmmov 0   ;;  %vm47_vm2 = vcmask 261120   ;;  %s195_s1 = inlined_call_operand.vmem [shape: bf16[32,96], index: 1, kind: input, shape index: {}]   ;;  %s196_s0 = inlined_call_operand.vmem [shape: bf16[16,32], index: 0, kind: input, shape index: {}]   ;;  %s197_s2 = inlined_call_operand.vmem [shape: f32[1,96], index: 2, kind: input, shape index: {}]   ;;  %s198_s3 = inlined_call_operand.vmem [shape: bf16[16,96], index: 3, kind: output, shape index: {}]  }
   0x1   :  { %138 = vmatprep.subr.bf16.mxu0 %v151_v0  ;;  %v148_v1 = vld [vmem:[%s195_s1] sm:$0xff]   ;;  %142 = vmatprep.mubr.msk.bf16.mxu0 %vm152_vm1, %v151_v0  ;;  %20 = vst.msk [vmem:[#allocation2] sm:$0xff] %vm19_vm0, %v151_v0  ;;  %21 = vst.msk [vmem:[#allocation2 + $0x8] sm:$0xff] %vm19_vm0, %v151_v0  ;;  %v149_v2 = vld [vmem:[%s195_s1 + $0x8] sm:$0xff]   ;;  %vm119_vm3 = vcmask 781312  }
   0x2   :  { %139 = vmatpush3.bf16.msra.mxu0 %v148_v1  ;;  %v150_v3 = vld [vmem:[%s196_s0] sm:$0xff]  }
   0x3   :  { %140 = vmatprep.subr.bf16.mxu0 %v151_v0  ;;  %v130_v12 = vld [vmem:[%s197_s2] ss:$0 sm:$0xff] }
   0x6   :  { %141 = vmatpush3.bf16.msra.mxu0 %v149_v2 }
   0x8   :  { %v22_v4 = vld [vmem:[#allocation2] sm:$0xff]  ;;  %v23_v6 = vld [vmem:[#allocation2 + $0x8] sm:$0xff] }
   0x9   :  { %143 = vmatmul.mubr.msk.bf16.vlgmr.msra.gmra.mrb[0].mxu0 %vm47_vm2, %v150_v3 }
  0xdc   :  { %v85_v5 = vpop.f32.mrb[0].mxu0 }
  0xdd   :  { %v92_v7 = vadd.f32 %v85_v5, %v22_v4  ;;  %v144_v8 = vpop.f32.mrb[1].mxu0 }
  0xde   :  { %v88_v9 = vpop.f32.mrb[2].mxu0 }
  0xdf   :  { %95 = vst.msk [vmem:[#allocation2] sm:$0xff] %vm19_vm0, %v92_v7  ;;  %v93_v10 = vadd.f32 %v88_v9, %v23_v6  ;;  %v145_v11 = vpop.f32.mrb[3].mxu0 }
  0xe1   :  { %96 = vst.msk [vmem:[#allocation2 + $0x8] sm:$0xff] %vm19_vm0, %v93_v10 }
  0xe6   :  { %v100_v13 = vld [vmem:[#allocation2] sm:$0xff] }
  0xe7   :  { %v109_v14 = vadd.f32 %v130_v12, %v100_v13 }
  0xe8   :  { %v101_v15 = vld [vmem:[#allocation2 + $0x8] sm:$0xff] }
  0xe9   :  { %v133_v16 = vpack.c.bf16 %v109_v14, %v109_v14  ;;  %v110_v17 = vadd.f32 %v130_v12, %v101_v15 }
  0xeb   :  { %120 = vst.msk [vmem:[%s198_s3] sm:$0xf] %vm119_vm3, %v133_v16  ;;  %v134_v18 = vpack.c.bf16 %v110_v17, %v110_v17 }
  0xed   :  { %121 = vst.msk [vmem:[%s198_s3 + $0x4] sm:$0xf] %vm119_vm3, %v134_v18 }

// kernel: transformer_encoder_forward.12
= control target key start
LH: loop header
LB: loop body
LE: loop exit
PB: predicated region body
PF: predicated region fallthrough
CT: control target
= control target key end

     0   :  { %9 = vsyncpa [#allocation3], 0  ;;  %s1308_s0 = inlined_call_operand.vmem [shape: bf16[2,8,96], index: 0, kind: input, shape index: {}]   ;;  %s1309_s1 = inlined_call_operand.vmem [shape: f32[2,1,8], index: 1, kind: input, shape index: {}]   ;;  %s1310_s2 = inlined_call_operand.vmem [shape: bf16[2,8,32], index: 2, kind: output, shape index: {0}]   ;;  %s1311_s3 = inlined_call_operand.hbm [shape: f32[2,4,8,8], index: 3, kind: output, shape index: {1}]  }
   0x1   :  { %11 = vsyncpa [#allocation3 + $0x1], 0  ;;  %s1093_s12 = smov 0   ;;  %s1095_s13 = smov 0  }
   0x2   :  { %s1097_s14 = smov 0   ;;  %s1099_s15 = smov 0  }
   0x3 LB: > { %s1114_s16 = sadd.s32 4294967295, %s1053_s15   ;;  %s816_s17 = sadd.s32 4294967294, %s1053_s15   ;;  %s1053_s15 = sphi %s1099_s15, %s1317_s15   ;;  %s1049_s14 = sphi %s1097_s14, %s1316_s14   ;;  %s1045_s13 = sphi %s1095_s13, %s1315_s13   ;;  %s1041_s12 = sphi %s1093_s12, %s1314_s12  }
   0x4   : > { %s1118_s18 = sadd.s32 1, %s1053_s15   ;;  %s102_s19 = sadd.s32 1, %s1049_s14 }
   0x5   : > { %s99_s20 = ssub.s32 %s1053_s15, %s1118_s18  ;;  %p112_p0 = scmp.ne.s32.totalorder %s1049_s14, %s1045_s13 }
   0x6   : > { %p100_p1 = scmp.eq.s32.totalorder %s99_s20, 0  ;;  %p113_p2 = scmp.eq.s32.totalorder %s1114_s16, 1 }
   0x7   : > { %p118_p3 = scmp.ne.s32.totalorder %s1045_s13, %s1041_s12  ;;  %p119_p4 = scmp.eq.s32.totalorder %s816_s17, 1 }
   0x8   : > { %s1129_s21 = scalar_select %p100_p1, %s1049_s14, %s102_s19  }
   0x9   : > { %p1131_p5 = por %p113_p2, %p112_p0  ;;  %p1135_p6 = por %p119_p4, %p118_p3 }
   0xa   : > { %p819_p7 = scmp.ge.s32.totalorder %s1053_s15, 1  ;;  %p150_p8 = scmp.lt.s32.totalorder %s1053_s15, 3 }
   0xc   : > { %p151_p9 = pnand %p819_p7, %p150_p8 }
   0xd   : > { %p180_p10 = scmp.lt.s32.totalorder (!%p151_p9), %s1114_s16, 1  ;;  %v1055_v0 = vmov (!%p151_p9), 0.0   ;;  %vm1056_vm0 = vmmov (!%p151_p9), 0   ;;  %s1057_s29 = smov (!%p151_p9), 96   ;;  %vm199_vm1 = vcmask (!%p151_p9), 64512   ;;  %vm271_vm2 = vcmask (!%p151_p9), 1043456  }
   0xe   : > { %154 = sbr.rel (%p151_p9) target bundleno = 1622 (0x656), region = 28  ;;  %867 = vmatprep.subr.bf16.mxu0 (!%p151_p9), %v1055_v0  ;;  %869 = vmatprep.mubr.msk.bf16.mxu0 (!%p151_p9), %vm1056_vm0, %v1055_v0  ;;  %s1058_s30 = smov (!%p151_p9), 64   ;;  %vm316_vm3 = vcmask (!%p151_p9), 60416  }
   0xf   : > { %873 = vmatprep.subr.bf16.mxu1 (!%p151_p9), %v1055_v0  ;;  %875 = vmatprep.mubr.msk.bf16.mxu1 (!%p151_p9), %vm1056_vm0, %v1055_v0  ;;  %s1059_s4 = smov (!%p151_p9), 88   ;;  %s1060_s8 = smov (!%p151_p9), 72  }
  0x10   : > { %s1061_s9 = smov (!%p151_p9), 120   ;;  %s1062_s10 = smov (!%p151_p9), 80  }
  0x11   : > { %s1063_s11 = smov (!%p151_p9), 112   ;;  %s1064_s17 = smov (!%p151_p9), 104  }
  0x12   : > { %s177_s19 = sand.u32 (!%p151_p9), 1, %s1045_s13   ;;  %s850_s5 = sshll.u32 (!%p151_p9), %s1114_s16, 9 }
  0x13   : > { %s820_s20 = sshll.u32 (!%p151_p9), %s177_s19, 5 }
  0x14   : > { %s1194_s26 = scalar_lea.vmem (!%p151_p9), [#allocation2], %s820_s20 }
  0x15   : > { %s1146_s24 = scalar_select %p180_p10, %s1114_s16, 1 }
  0x16   : > { %s721_s6 = sshll.u32 %s1194_s26, 4  ;;  %s1069_s16 = smov [#allocation2]   ;;  %s1259_s6 = int_to_ptr.vmem [resolvable:$true] %s721_s6 }
  0x17   : > { %s821_s25 = sshll.u32 %s1146_s24, 2  ;;  %s186_s7 = scalar_lea.vmem %s1309_s1, %s1146_s24 }
  0x18   : > { %s1157_s28 = scalar_lea.vmem %s1308_s0, %s821_s25  ;;  %v1173_v7 = vld [vmem:[%s186_s7] ss:$0 sm:$0xff]  ;;  %s1065_s24 = smov 56  }
  0x19   : > { %v193_v1 = vld [vmem:[%s1157_s28] sm:$0xf] }
  0x1a   : > { %v823_v2 = vcombine.low %v193_v1, %v193_v1  ;;  %v1166_v5 = vld [vmem:[%s1157_s28] ss:$0 sps:$4 sm:$0xff]  }
  0x1b   : > { %v1178_v14 = vld [vmem:[%s1157_s28] ss:$0 sps:$4 sm:$0xff]  }
  0x1c   : > { %197 = vrot.lane.b32.xlu0 %v823_v2, %s1057_s29  ;;  %266 = vrot.lane.b32.xlu1 %v823_v2, %s1058_s30  ;;  %v1186_v22 = vld [vmem:[%s1157_s28] ss:$0 sps:$4 sm:$0xff]   ;;  %s1218_s29 = scalar_lea.vmem %s1310_s2, %s821_s25  ;;  %s1066_s25 = smov 48  }
  0x1d   : > { %s1067_s30 = smov 40  }
  0x20   : > { %325 = vrot.lane.b32.xlu1 %v1166_v5, %s1059_s4  ;;  %s1068_s4 = smov 8  }
  0x8e   : > { %v198_v3 = vpop.permute.xlu0 %197  ;;  %v267_v15 = vpop.permute.xlu1 %266 }
  0x8f   : > { %v204_v4 = vsel %vm199_vm1, %v198_v3, 0  ;;  %v273_v16 = vsel %vm271_vm2, %v267_v15, 0 }
  0x90   : > { %868 = vmatpush3.bf16.xpose.msra.mxu0 %v204_v4  ;;  %874 = vmatpush3.bf16.msra.mxu1 %v273_v16 }
  0x91   : > { %885 = vmatprep.subr.bf16.mxu0 %v1055_v0  ;;  %879 = vmatprep.subr.bf16.mxu1 %v1055_v0 }
  0x92   : > { %v326_v23 = vpop.permute.xlu1 %325 }
  0x93   : > { %v331_v29 = vsel %vm199_vm1, %v326_v23, 0 }
  0x97   : > { %870 = vmatmul.mubr.msk.bf16.vlgmr.msra.gmra.mrb[0].mxu0 %vm199_vm1, %v193_v1 }
  0x98   : > { %887 = vmatprep.mubr.msk.bf16.mxu0 %vm1056_vm0, %v1055_v0 }
 0x16a   : > { %v240_v6 = vpop.f32.mrb[0].mxu0 }
 0x16b   : > { %v246_v8 = vmul.f32 0.35355338, %v240_v6  ;;  %v871_v9 = vpop.f32.mrb[1].mxu0 }
 0x16c   : > { %v243_v10 = vpop.f32.mrb[2].mxu0 }
 0x16d   : > { %v872_v11 = vpop.f32.mrb[3].mxu0  ;;  %v253_v12 = vadd.f32 %v1173_v7, %v246_v8 }
 0x16f   : > { %v254_v13 = vsel %vm199_vm1, %v253_v12, -inf }
 0x170   : > { %255 = vmax.xlane.f32.xlu0 %v254_v13 }
 0x186   : > { %579 = vrot.lane.b32.xlu0 %v1178_v14, %s1060_s8 }
 0x1fd   : > { %v256_v17 = vpop.xlane.xlu0 %255 }
 0x1fe   : > { %v257_v18 = vsub.f32 %v253_v12, %v256_v17 }
 0x200   : > { %v258_v19 = vmul.f32 1.442695, %v257_v18 }
 0x201   : > { %v580_v32 = vpop.permute.xlu0 %579 }
 0x202   : > { %975 = vpow2.f32 %v258_v19  ;;  %v585_v34 = vsel %vm199_vm1, %v580_v32, 0 }
 0x20c   : > { %v976_v20 = vpop.eup %975 }
 0x20d   : > { %v260_v21 = vsel %vm199_vm1, %v976_v20, 0.0 }
 0x20e   : > { %261 = vadd.xlane.f32.xlu1 %v260_v21 }
 0x21f   : > { %323 = vrot.lane.b32.xlu1 %v1166_v5, %s1061_s9  ;;  %s1257_s9 = scalar_lea.hbm %s1311_s3, %s850_s5 }
 0x223   : > { %452 = vrot.lane.b32.xlu1 %v1186_v22, %s1062_s10  ;;  %s1263_s10 = scalar_lea.sflag [#allocation3], %s177_s19 }
 0x227   : > { %450 = vrot.lane.b32.xlu1 %v1186_v22, %s1063_s11  ;;  %s991_s11 = scalar_lea.vmem %s1259_s6, 512 }
 0x228   : > { %p992_p11 = scmp.ne.s32.totalorder %s1259_s6, %s991_s11 }
 0x22a   : > { %p993_p12 = pnand %p992_p11, %p1131_p5 }
 0x22b   : > { %577 = vrot.lane.b32.xlu1 %v1178_v14, %s1064_s17  ;;  %s995_s17 = sshll.u32 %s1069_s16, 4  ;;  %s996_s17 = int_to_ptr.vmem [resolvable:$false] %s995_s17 }
 0x22c   : > { %p994_p13 = pneg %p993_p12  ;;  %s997_s20 = scalar_lea.vmem %s996_s17, 1024 }
 0x22d   : > { %p998_p0 = scmp.lt.s32.totalorder %s1259_s6, %s996_s17  ;;  %p999_p1 = scmp.lt.s32.totalorder %s997_s20, %s991_s11 }
 0x22f   : > { %p1000_p2 = por %p999_p1, %p998_p0 }
 0x231   : > { %p1001_p3 = pnand %p1000_p2, %p994_p13 }
 0x29b   : > { %v262_v24 = vpop.xlane.xlu1 %261 }
 0x29c   : > { %977 = vrcp.f32 %v262_v24 }
 0x29f   : > { %v324_v27 = vpop.permute.xlu1 %323 }
 0x2a3   : > { %v453_v30 = vpop.permute.xlu1 %452 }
 0x2a4   : > { %v458_v31 = vsel %vm199_vm1, %v453_v30, 0 }
 0x2a6   : > { %v978_v25 = vpop.eup %977 }
 0x2a7   : > { %v264_v26 = vmul.f32 %v978_v25, %v976_v20  ;;  %v451_v33 = vpop.permute.xlu1 %450 }
 0x2a9   : > { %v265_v28 = vpack.c.bf16 %v264_v26, %v264_v26  ;;  %318 = vst.msk [vmem:[%s1194_s26] sm:$0xff] %vm199_vm1, %v264_v26 }
 0x2ab   : > { %876 = vmatmul.mubr.msk.bf16.vlgmr.msra.gmra.mrb[0].mxu1 %vm199_vm1, %v265_v28  ;;  %v578_v35 = vpop.permute.xlu1 %577 }
 0x2ac   : > { %880 = vmatpush3.bf16.xpose.msra.mxu1 %v331_v29  ;;  %881 = vmatprep.mubr.msk.bf16.mxu1 %vm1056_vm0, %v1055_v0 }
 0x2ad   : > { %891 = vmatprep.subr.bf16.mxu1 %v1055_v0 }
 0x2b3   : > { %882 = vmatmul.mubr.msk.bf16.vlgmr.msra.gmra.mrb[4].mxu1 %vm199_vm1, %v324_v27 }
 0x2b4   : > { %892 = vmatpush3.bf16.xpose.msra.mxu1 %v458_v31  ;;  %893 = vmatprep.mubr.msk.bf16.mxu1 %vm1056_vm0, %v1055_v0 }
 0x2b5   : > { %903 = vmatprep.subr.bf16.mxu1 %v1055_v0 }
 0x2bb   : > { %894 = vmatmul.mubr.msk.bf16.vlgmr.msra.gmra.mrb[8].mxu1 %vm199_vm1, %v451_v33 }
 0x2bc   : > { %904 = vmatpush3.bf16.xpose.msra.mxu1 %v585_v34  ;;  %905 = vmatprep.mubr.msk.bf16.mxu1 %vm1056_vm0, %v1055_v0 }
 0x2c3   : > { %906 = vmatmul.mubr.msk.bf16.vlgmr.msra.gmra.mrb[12].mxu1 %vm199_vm1, %v578_v35 }
 0x37e   : > { %v309_v36 = vpop.f32.mrb[0].mxu1 }
 0x37f   : > { %v315_v37 = vpack.c.bf16 %v309_v36, %v309_v36  ;;  %v877_v38 = vpop.f32.mrb[1].mxu1 }
 0x380   : > { %v312_v39 = vpop.f32.mrb[2].mxu1 }
 0x381   : > { %317 = vst.msk [vmem:[%s1218_s29] sm:$0xf] %vm316_vm3, %v315_v37  ;;  %v878_v40 = vpop.f32.mrb[3].mxu1 }
 0x386   : > { %v367_v41 = vpop.f32.mrb[4].mxu1 }
 0x387   : > { %v373_v42 = vmul.f32 0.35355338, %v367_v41  ;;  %v883_v43 = vpop.f32.mrb[5].mxu1 }
 0x388   : > { %v370_v44 = vpop.f32.mrb[6].mxu1 }
 0x389   : > { %v884_v45 = vpop.f32.mrb[7].mxu1  ;;  %v374_v46 = vadd.f32 %v1173_v7, %v373_v42 }
 0x38b   : > { %v375_v47 = vsel %vm199_vm1, %v374_v46, -inf }
 0x38c   : > { %376 = vmax.xlane.f32.xlu1 %v375_v47 }
 0x38e   : > { %v494_v48 = vpop.f32.mrb[8].mxu1 }
 0x38f   : > { %v500_v49 = vmul.f32 0.35355338, %v494_v48  ;;  %v895_v50 = vpop.f32.mrb[9].mxu1 }
 0x390   : > { %v497_v51 = vpop.f32.mrb[10].mxu1 }
 0x391   : > { %v501_v52 = vadd.f32 %v1173_v7, %v500_v49  ;;  %v896_v53 = vpop.f32.mrb[11].mxu1 }
 0x393   : > { %v502_v54 = vsel %vm199_vm1, %v501_v52, -inf }
 0x394   : > { %503 = vmax.xlane.f32.xlu0 %v502_v54 }
 0x396   : > { %v621_v55 = vpop.f32.mrb[12].mxu1 }
 0x397   : > { %v627_v56 = vmul.f32 0.35355338, %v621_v55  ;;  %v907_v57 = vpop.f32.mrb[13].mxu1 }
 0x398   : > { %v624_v58 = vpop.f32.mrb[14].mxu1 }
 0x399   : > { %v628_v59 = vadd.f32 %v1173_v7, %v627_v56  ;;  %v908_v60 = vpop.f32.mrb[15].mxu1 }
 0x39b   : > { %v629_v61 = vsel %vm199_vm1, %v628_v59, -inf }
 0x39c   : > { %630 = vmax.xlane.f32.xlu1 %v629_v61 }
 0x419   : > { %v377_v62 = vpop.xlane.xlu1 %376 }
 0x41a   : > { %v378_v63 = vsub.f32 %v374_v46, %v377_v62 }
 0x41c   : > { %v379_v1 = vmul.f32 1.442695, %v378_v63 }
 0x41e   : > { %979 = vpow2.f32 %v379_v1 }
 0x421   : > { %v504_v7 = vpop.xlane.xlu0 %503 }
 0x422   : > { %v505_v11 = vsub.f32 %v501_v52, %v504_v7 }
 0x424   : > { %v506_v12 = vmul.f32 1.442695, %v505_v11 }
 0x428   : > { %v980_v2 = vpop.eup %979 }
 0x429   : > { %v631_v3 = vpop.xlane.xlu1 %630  ;;  %v381_v4 = vsel %vm199_vm1, %v980_v2, 0.0 }
 0x42a   : > { %v632_v6 = vsub.f32 %v628_v59, %v631_v3  ;;  %382 = vadd.xlane.f32.xlu1 %v381_v4 }
 0x42c   : > { %v633_v8 = vmul.f32 1.442695, %v632_v6 }
 0x42e   : > { %981 = vpow2.f32 %v633_v8 }
 0x42f   : > { %983 = vpow2.f32 %v506_v12 }
 0x438   : > { %v982_v9 = vpop.eup %981 }
 0x439   : > { %v635_v10 = vsel %vm199_vm1, %v982_v9, 0.0  ;;  %v984_v13 = vpop.eup %983 }
 0x43a   : > { %636 = vadd.xlane.f32.xlu0 %v635_v10  ;;  %v508_v15 = vsel %vm199_vm1, %v984_v13, 0.0 }
 0x43b   : > { %387 = vrot.lane.b32.xlu1 %v1166_v5, %s1065_s24 }
 0x450   : > { %514 = vrot.lane.b32.xlu0 %v1186_v22, %s1066_s25 }
 0x45f   : > { %509 = vadd.xlane.f32.xlu1 %v508_v15 }
 0x470   : > { %641 = vrot.lane.b32.xlu1 %v1178_v14, %s1067_s30 }
 0x4b7   : > { %v383_v16 = vpop.xlane.xlu1 %382 }
 0x4b8   : > { %985 = vrcp.f32 %v383_v16 }
 0x4bb   : > { %v388_v17 = vpop.permute.xlu1 %387 }
 0x4bc   : > { %v393_v5 = vsel %vm271_vm2, %v388_v17, 0 }
 0x4bd   : > { %886 = vmatpush3.bf16.msra.mxu0 %v393_v5 }
 0x4be   : > { %897 = vmatprep.subr.bf16.mxu0 %v1055_v0 }
 0x4c2   : > { %v986_v18 = vpop.eup %985 }
 0x4c3   : > { %v385_v19 = vmul.f32 %v986_v18, %v980_v2 }
 0x4c5   : > { %831 = vst.msk [vmem:[%s1194_s26 + $0x8] sm:$0xff] %vm199_vm1, %v385_v19  ;;  %v386_v20 = vpack.c.bf16 %v385_v19, %v385_v19 }
 0x4c7   : > { %888 = vmatmul.mubr.msk.bf16.vlgmr.msra.gmra.mrb[4].mxu0 %vm199_vm1, %v386_v20  ;;  %v637_v21 = vpop.xlane.xlu0 %636 }
 0x4c8   : > { %987 = vrcp.f32 %v637_v21  ;;  %899 = vmatprep.mubr.msk.bf16.mxu0 %vm1056_vm0, %v1055_v0 }
 0x4cb   : > { %v515_v14 = vpop.permute.xlu0 %514 }
 0x4cc   : > { %v520_v22 = vsel %vm271_vm2, %v515_v14, 0 }
 0x4cd   : > { %898 = vmatpush3.bf16.msra.mxu0 %v520_v22 }
 0x4ce   : > { %909 = vmatprep.subr.bf16.mxu0 %v1055_v0 }
 0x4d2   : > { %v988_v23 = vpop.eup %987 }
 0x4d3   : > { %v639_v24 = vmul.f32 %v988_v23, %v982_v9 }
 0x4d5   : > { %841 = vst.msk [vmem:[%s1194_s26 + $0x18] sm:$0xff] %vm199_vm1, %v639_v24  ;;  %v640_v31 = vpack.c.bf16 %v639_v24, %v639_v24 }
 0x4ec   : > { %v510_v25 = vpop.xlane.xlu1 %509 }
 0x4ed   : > { %989 = vrcp.f32 %v510_v25 }
 0x4f0   : > { %v642_v27 = vpop.permute.xlu1 %641 }
 0x4f1   : > { %v647_v29 = vsel %vm271_vm2, %v642_v27, 0 }
 0x4f7   : > { %v990_v26 = vpop.eup %989 }
 0x4f8   : > { %v512_v28 = vmul.f32 %v990_v26, %v984_v13 }
 0x4fa   : > { %836 = vst.msk [vmem:[%s1194_s26 + $0x10] sm:$0xff] %vm199_vm1, %v512_v28  ;;  %v513_v30 = vpack.c.bf16 %v512_v28, %v512_v28 }
 0x4fc   : > { %900 = vmatmul.mubr.msk.bf16.vlgmr.msra.gmra.mrb[8].mxu0 %vm199_vm1, %v513_v30 }
 0x4fd   : > { %910 = vmatpush3.bf16.msra.mxu0 %v647_v29  ;;  %911 = vmatprep.mubr.msk.bf16.mxu0 %vm1056_vm0, %v1055_v0 }
 0x504   : > { %912 = vmatmul.mubr.msk.bf16.vlgmr.msra.gmra.mrb[12].mxu0 %vm199_vm1, %v640_v31 }
 0x59a   : > { %v429_v32 = vpop.f32.mrb[4].mxu0 }
 0x59b   : > { %v847_v33 = vpack.c.bf16 %v429_v32, %v429_v32  ;;  %v889_v34 = vpop.f32.mrb[5].mxu0 }
 0x59c   : > { %v432_v35 = vpop.f32.mrb[6].mxu0 }
 0x59d   : > { %439 = vrot.lane.b32.xlu1 %v847_v33, %s1068_s4  ;;  %v890_v36 = vpop.f32.mrb[7].mxu0 }
 0x5cf   : > { %v556_v0 = vpop.f32.mrb[8].mxu0 }
 0x5d0   : > { %1004 = shalt.err (!%p1001_p3)
}
 0x5d1   : > { %s1005_s19 = scalar_lea.hbm %s1257_s9, 512  ;;  %s1009_s28 = scalar_lea.hbm %s1311_s3, 1024 }
 0x5d2   : > { %p1006_p4 = scmp.ne.s32.totalorder %s1257_s9, %s1005_s19  ;;  %p1010_p9 = scmp.lt.u32.totalorder %s1257_s9, %s1311_s3 }
 0x5d3   : > { %p1011_p10 = scmp.lt.u32.totalorder %s1009_s28, %s1005_s19  ;;  %p1013_p12 = scmp.lt.u32.totalorder %s1005_s19, %s1257_s9 }
 0x5d4   : > { %p1007_p7 = pnand %p1006_p4, %p1131_p5 }
 0x5d5   : > { %p1012_p11 = por %p1011_p10, %p1010_p9 }
 0x5d6   : > { %p1008_p8 = pneg %p1007_p7 }
 0x5d7   : > { %p1014_p13 = por %p1013_p12, %p1012_p11 }
 0x5d9   : > { %p1015_p0 = pnand %p1014_p13, %p1008_p8 }
 0x5db   : > { %1018 = shalt.err (!%p1015_p0)
}
 0x5dc   : > { %s1070_s30 = smov 128   ;;  %v848_v37 = vpack.c.bf16 %v556_v0, %v556_v0  ;;  %v901_v38 = vpop.f32.mrb[9].mxu0  ;;  %s1071_s5 = smov 16   ;;  %vm442_vm4 = vcmask 126016   ;;  %vm569_vm5 = vcmask 191616   ;;  %vm696_vm6 = vcmask 257216  }
 0x5dd   : > { %915 = dma.vmem_to_hbm [thread:$0]  (%p1131_p5), %s1259_s6, 512, %s1257_s9, %s1263_s10, %s1070_s30, %s1070_s30, %s1068_s4   ;;  %v559_v39 = vpop.f32.mrb[10].mxu0 }
 0x5de   : > { %566 = vrot.lane.b32.xlu0 %v848_v37, %s1071_s5  ;;  %v902_v40 = vpop.f32.mrb[11].mxu0  ;;  %s1072_s7 = smov 24  }
 0x5df   : > { %v683_v41 = vpop.f32.mrb[12].mxu0 }
 0x5e0   : > { %v849_v42 = vpack.c.bf16 %v683_v41, %v683_v41  ;;  %v913_v43 = vpop.f32.mrb[13].mxu0 }
 0x5e1   : > { %v686_v44 = vpop.f32.mrb[14].mxu0 }
 0x5e2   : > { %693 = vrot.lane.b32.xlu1 %v849_v42, %s1072_s7  ;;  %v914_v45 = vpop.f32.mrb[15].mxu0 }
 0x60f   : > { %v440_v46 = vpop.permute.xlu1 %439 }
 0x610   : > { %443 = vst.msk [vmem:[%s1218_s29] sm:$0xf] %vm442_vm4, %v440_v46 }
 0x650   : > { %v567_v47 = vpop.permute.xlu0 %566 }
 0x651   : > { %570 = vst.msk [vmem:[%s1218_s29] sm:$0xf] %vm569_vm5, %v567_v47 }
 0x654   : > { %v694_v48 = vpop.permute.xlu1 %693 }
 0x655   : > { %697 = vst.msk [vmem:[%s1218_s29] sm:$0xf] %vm696_vm6, %v694_v48 }
 0x656 PF: > { %p921_p5 = scmp.ge.s32.totalorder %s1053_s15, 2  ;;  %s743_s22 = sand.u32 1, %s1041_s12  }
 0x657   : > { %s744_s4 = scalar_lea.sflag [#allocation3], %s743_s22 }
 0x658   : > { %p918_p1 = pnand %p921_p5, %p1135_p6 }
 0x65a   : > { %1036 = dma.done.wait (!%p918_p1), %s744_s4, 512  }
 0x65b   : > { %1038 = vsyncadd (!%p918_p1), %s744_s4, 4294966784  ;;  %p14_p2 = scmp.ge.s32.totalorder %s1118_s18, 4   ;;  %s1314_s12 = smov %s1045_s13 }
 0x65c   : > { %s1315_s13 = smov %s1049_s14  ;;  %s1316_s14 = smov %s1129_s21 }
 0x65d   : > { %s1317_s15 = smov %s1118_s18  ;;  %16 = sbr.rel (!%p14_p2) target bundleno = 3 (0x3), region = 81 }
 0x664   :  { %749 = vsyncpa [#allocation3], 1 }
 0x665   :  { %751 = vsyncpa [#allocation3 + $0x1], 1 }

// kernel: transformer_encoder_forward.21
= control target key start
LH: loop header
LB: loop body
LE: loop exit
PB: predicated region body
PF: predicated region fallthrough
CT: control target
= control target key end

     0   :  { %v178_v1 = vmov 0.0   ;;  %vm179_vm0 = vmmov 0   ;;  %vm20_vm1 = vcmask 130048   ;;  %s233_s0 = inlined_call_operand.vmem [shape: bf16[16,32], index: 0, kind: input, shape index: {}]   ;;  %s234_s1 = inlined_call_operand.vmem [shape: bf16[32,16], index: 1, kind: input, shape index: {}]   ;;  %s235_s2 = inlined_call_operand.vmem [shape: f32[1,16], index: 2, kind: input, shape index: {}]   ;;  %s236_s3 = inlined_call_operand.hbm [shape: f32[16,16], index: 3, kind: output, shape index: {}]  }
   0x1   :  { %v151_v0 = vld [vmem:[%s234_s1] sm:$0xff]   ;;  %138 = vmatprep.subr.bf16.mxu0 %v178_v1  ;;  %v152_v2 = vld [vmem:[%s234_s1 + $0x8] sm:$0xff]   ;;  %142 = vmatprep.mubr.msk.bf16.mxu0 %vm179_vm0, %v178_v1 }
   0x2   :  { %139 = vmatpush3.bf16.msra.mxu0 %v151_v0 }
   0x3   :  { %140 = vmatprep.subr.bf16.mxu0 %v178_v1 }
   0x4   :  { %8 = vsyncpa [#allocation4], 0  ;;  %21 = vst.msk [vmem:[#allocation2] sm:$0xff] %vm20_vm1, %v178_v1  ;;  %v153_v3 = vld [vmem:[%s233_s0] sm:$0xff]   ;;  %vm48_vm2 = vcmask 261120   ;;  %s180_s0 = smov [#allocation3]  }
   0x5   :  { %22 = vst.msk [vmem:[#allocation2 + $0x8] sm:$0xff] %vm20_vm1, %v178_v1  ;;  %v134_v12 = vld [vmem:[%s235_s2] ss:$0 sm:$0xff]  ;;  %s119_s19 = sshll.u32 %s180_s0, 4  ;;  %s120_s19 = int_to_ptr.vmem [resolvable:$true] %s119_s19 }
   0x6   :  { %141 = vmatpush3.bf16.msra.mxu0 %v152_v2  ;;  %s154_s20 = scalar_lea.vmem %s120_s19, 256  ;;  %p159_p1 = scmp.lt.s32.totalorder %s120_s19, %s120_s19 }
   0x7   :  { %p155_p0 = scmp.ne.s32.totalorder %s120_s19, %s154_s20  ;;  %p160_p2 = scmp.lt.s32.totalorder %s154_s20, %s154_s20 }
   0x9   :  { %143 = vmatmul.mubr.msk.bf16.vlgmr.msra.gmra.mrb[0].mxu0 %vm48_vm2, %v153_v3  ;;  %p161_p3 = por %p160_p2, %p159_p1 }
   0xb   :  { %v23_v4 = vld [vmem:[#allocation2] sm:$0xff]  ;;  %p162_p4 = pnand %p161_p3, %p155_p0 }
   0xc   :  { %v24_v6 = vld [vmem:[#allocation2 + $0x8] sm:$0xff] }
  0xdc   :  { %v86_v5 = vpop.f32.mrb[0].mxu0 }
  0xdd   :  { %v93_v7 = vadd.f32 %v86_v5, %v23_v4  ;;  %v144_v8 = vpop.f32.mrb[1].mxu0 }
  0xde   :  { %v89_v9 = vpop.f32.mrb[2].mxu0 }
  0xdf   :  { %96 = vst.msk [vmem:[#allocation2] sm:$0xff] %vm20_vm1, %v93_v7  ;;  %v94_v10 = vadd.f32 %v89_v9, %v24_v6  ;;  %v145_v11 = vpop.f32.mrb[3].mxu0 }
  0xe1   :  { %97 = vst.msk [vmem:[#allocation2 + $0x8] sm:$0xff] %vm20_vm1, %v94_v10 }
  0xe6   :  { %v101_v13 = vld [vmem:[#allocation2] sm:$0xff] }
  0xe7   :  { %v110_v14 = vadd.f32 %v134_v12, %v101_v13 }
  0xe8   :  { %v102_v15 = vld [vmem:[#allocation2 + $0x8] sm:$0xff] }
  0xe9   :  { %v111_v16 = vadd.f32 %v134_v12, %v102_v15  ;;  %112 = vst.msk [vmem:[#allocation3] sm:$0xff] %vm20_vm1, %v110_v14 }
  0xeb   :  { %113 = vst.msk [vmem:[#allocation3 + $0x8] sm:$0xff] %vm20_vm1, %v111_v16 }
  0xec   :  { %165 = shalt.err (!%p162_p4)
}
  0xed   :  { %s166_s22 = scalar_lea.hbm %s236_s3, 256 }
  0xee   :  { %p167_p5 = scmp.ne.s32.totalorder %s236_s3, %s166_s22  ;;  %p170_p6 = scmp.lt.u32.totalorder %s166_s22, %s236_s3 }
  0xf0   :  { %p172_p7 = pnand %p170_p6, %p167_p5 }
  0xf2   :  { %175 = shalt.err (!%p172_p7)
}
  0xf3   :  { %s181_s27 = smov 128   ;;  %s182_s28 = smov 8  }
  0xf4   :  { %125 = dma.vmem_to_hbm [thread:$0]  %s120_s19, 256, %s236_s3, [#allocation4], %s181_s27, %s181_s27, %s182_s28  }
  0xf5   :  { %176 = dma.done.wait [#allocation4], 256  }
  0xf6   :  { %177 = vsyncadd [#allocation4], 4294967040 }
  0xf7   :  { %129 = vsyncpa [#allocation4], 1 }

// kernel: transformer_encoder_forward.15
= control target key start
LH: loop header
LB: loop body
LE: loop exit
PB: predicated region body
PF: predicated region fallthrough
CT: control target
= control target key end

     0   :  { %vm28_vm0 = vcmask 261120   ;;  %v247_v0 = vmov 0.0   ;;  %vm248_vm1 = vmmov 0   ;;  %vm72_vm2 = vcmask 523264   ;;  %s325_s1 = inlined_call_operand.vmem [shape: bf16[64,32], index: 1, kind: input, shape index: {}]   ;;  %s326_s0 = inlined_call_operand.vmem [shape: bf16[16,64], index: 0, kind: input, shape index: {}]   ;;  %s327_s3 = inlined_call_operand.vmem [shape: bf16[16,32], index: 3, kind: input, shape index: {}]   ;;  %s328_s2 = inlined_call_operand.vmem [shape: f32[1,32], index: 2, kind: input, shape index: {}]   ;;  %s329_s4 = inlined_call_operand.vmem [shape: f32[1,32], index: 4, kind: input, shape index: {}]   ;;  %s330_s5 = inlined_call_operand.vmem [shape: f32[1,32], index: 5, kind: input, shape index: {}]   ;;  %s331_s6 = inlined_call_operand.vmem [shape: bf16[16,32], index: 6, kind: output, shape index: {}]  }
   0x1   :  { %224 = vmatprep.subr.bf16.mxu0 %v247_v0  ;;  %v238_v1 = vld [vmem:[%s325_s1] sm:$0xff]   ;;  %232 = vmatprep.mubr.msk.bf16.mxu0 %vm248_vm1, %v247_v0  ;;  %29 = vst.msk [vmem:[#allocation2] sm:$0xff] %vm28_vm0, %v247_v0  ;;  %30 = vst.msk [vmem:[#allocation2 + $0x8] sm:$0xff] %vm28_vm0, %v247_v0  ;;  %v239_v2 = vld [vmem:[%s325_s1 + $0x8] sm:$0xff]   ;;  %vm195_vm3 = vcmask 257024  }
   0x2   :  { %225 = vmatpush3.bf16.msra.mxu0 %v238_v1  ;;  %v240_v3 = vld [vmem:[%s325_s1 + $0x10] sm:$0xff]   ;;  %v241_v4 = vld [vmem:[%s325_s1 + $0x18] sm:$0xff]   ;;  %v242_v5 = vld [vmem:[%s326_s0] sm:$0xff]  }
   0x3   :  { %226 = vmatprep.subr.bf16.mxu0 %v247_v0  ;;  %v216_v14 = vld [vmem:[%s327_s3] sm:$0xff]  }
   0x4   :  { %v208_v15 = vld [vmem:[%s328_s2] ss:$0 sm:$0xff]  ;;  %v217_v16 = vunpack.c.l.bf16 %v216_v14  ;;  %v218_v19 = vunpack.c.h.bf16 %v216_v14 }
   0x5   :  { %v209_v43 = vld [vmem:[%s329_s4] ss:$0 sm:$0xff] }
   0x6   :  { %227 = vmatpush3.bf16.msra.mxu0 %v239_v2  ;;  %v210_v45 = vld [vmem:[%s330_s5] ss:$0 sm:$0xff] }
   0x7   :  { %228 = vmatprep.subr.bf16.mxu0 %v247_v0 }
   0x8   :  { %v31_v6 = vld [vmem:[#allocation2] sm:$0xff]  ;;  %v32_v8 = vld [vmem:[#allocation2 + $0x8] sm:$0xff] }
   0xa   :  { %229 = vmatpush3.bf16.msra.mxu0 %v240_v3 }
   0xb   :  { %230 = vmatprep.subr.bf16.mxu0 %v247_v0 }
   0xe   :  { %231 = vmatpush3.bf16.msra.mxu0 %v241_v4 }
  0x11   :  { %233 = vmatmul.mubr.msk.bf16.vlgmr.msra.gmra.mrb[0].mxu0 %vm72_vm2, %v242_v5 }
  0xe4   :  { %v110_v7 = vpop.f32.mrb[0].mxu0 }
  0xe5   :  { %v117_v9 = vadd.f32 %v110_v7, %v31_v6  ;;  %v234_v10 = vpop.f32.mrb[1].mxu0 }
  0xe6   :  { %v113_v11 = vpop.f32.mrb[2].mxu0 }
  0xe7   :  { %120 = vst.msk [vmem:[#allocation2] sm:$0xff] %vm28_vm0, %v117_v9  ;;  %v118_v12 = vadd.f32 %v113_v11, %v32_v8  ;;  %v235_v13 = vpop.f32.mrb[3].mxu0 }
  0xe9   :  { %121 = vst.msk [vmem:[#allocation2 + $0x8] sm:$0xff] %vm28_vm0, %v118_v12 }
  0xee   :  { %v125_v17 = vld [vmem:[#allocation2] sm:$0xff] }
  0xef   :  { %v134_v18 = vadd.f32 %v208_v15, %v125_v17 }
  0xf0   :  { %v126_v20 = vld [vmem:[#allocation2 + $0x8] sm:$0xff] }
  0xf1   :  { %v140_v21 = vadd.f32 %v217_v16, %v134_v18  ;;  %v135_v22 = vadd.f32 %v208_v15, %v126_v20 }
  0xf3   :  { %v142_v23 = vsel %vm28_vm0, %v140_v21, 0.0  ;;  %v141_v24 = vadd.f32 %v218_v19, %v135_v22 }
  0xf4   :  { %143 = vadd.xlane.f32.xlu0 %v142_v23 }
  0xf5   :  { %v145_v25 = vsel %vm28_vm0, %v141_v24, 0.0 }
  0xf8   :  { %146 = vadd.xlane.f32.xlu0 %v145_v25 }
 0x181   :  { %v144_v26 = vpop.xlane.xlu0 %143 }
 0x182   :  { %v149_v27 = vmul.f32 0.03125, %v144_v26 }
 0x184   :  { %v151_v28 = vsub.f32 %v140_v21, %v149_v27 }
 0x185   :  { %v147_v29 = vpop.xlane.xlu0 %146 }
 0x186   :  { %v150_v30 = vmul.f32 0.03125, %v147_v29  ;;  %v153_v31 = vmul.f32 %v151_v28, %v151_v28 }
 0x188   :  { %v152_v32 = vsub.f32 %v141_v24, %v150_v30  ;;  %v155_v33 = vsel %vm28_vm0, %v153_v31, 0.0 }
 0x189   :  { %156 = vadd.xlane.f32.xlu1 %v155_v33 }
 0x18a   :  { %v154_v34 = vmul.f32 %v152_v32, %v152_v32 }
 0x18c   :  { %v158_v35 = vsel %vm28_vm0, %v154_v34, 0.0 }
 0x18d   :  { %159 = vadd.xlane.f32.xlu1 %v158_v35 }
 0x216   :  { %v157_v36 = vpop.xlane.xlu1 %156 }
 0x217   :  { %v161_v37 = vmul.f32 0.03125, %v157_v36 }
 0x219   :  { %v163_v38 = vadd.f32 1e-05, %v161_v37 }
 0x21a   :  { %v160_v39 = vpop.xlane.xlu1 %159 }
 0x21b   :  { %243 = vrsqrt.f32 %v163_v38  ;;  %v162_v40 = vmul.f32 0.03125, %v160_v39 }
 0x21d   :  { %v164_v41 = vadd.f32 1e-05, %v162_v40 }
 0x21f   :  { %245 = vrsqrt.f32 %v164_v41 }
 0x225   :  { %v244_v42 = vpop.eup %243 }
 0x226   :  { %v167_v44 = vmul.f32 %v244_v42, %v151_v28 }
 0x228   :  { %v176_v46 = vmul.f32 %v209_v43, %v167_v44 }
 0x229   :  { %v246_v47 = vpop.eup %245 }
 0x22a   :  { %v185_v48 = vadd.f32 %v210_v45, %v176_v46  ;;  %v168_v49 = vmul.f32 %v246_v47, %v152_v32 }
 0x22c   :  { %v213_v50 = vpack.c.bf16 %v185_v48, %v185_v48  ;;  %v177_v51 = vmul.f32 %v209_v43, %v168_v49 }
 0x22e   :  { %196 = vst.msk [vmem:[%s331_s6] sm:$0xf] %vm195_vm3, %v213_v50  ;;  %v186_v52 = vadd.f32 %v210_v45, %v177_v51 }
 0x230   :  { %v214_v53 = vpack.c.bf16 %v186_v52, %v186_v52 }
 0x232   :  { %197 = vst.msk [vmem:[%s331_s6 + $0x4] sm:$0xf] %vm195_vm3, %v214_v53 }

</bundles_post_ra>
